<compile_context>
chip_gen: v7x
topology: tpu7x:2x2x1
jax: 0.10.0
libtpu: 0.0.40
codegen_flags: <defaults>
</compile_context>

<pallas_src>
import functools

import jax
import jax.numpy as jnp
from jax.experimental import pallas as pl
from jax.experimental.pallas import tpu as pltpu


def _grad_loss_fused_kernel(pred_ref, targ_ref, mask_ref,
                            gsum_ref, msum_ref,
                            gaccx_ref, gaccy_ref, macc_ref):
    BB, H, W = pred_ref.shape
    scales = gaccx_ref.shape[0]

    @pl.when(pl.program_id(1) == 0)
    def _init():
        gaccx_ref[...] = jnp.zeros_like(gaccx_ref)
        gaccy_ref[...] = jnp.zeros_like(gaccy_ref)
        macc_ref[...] = jnp.zeros_like(macc_ref)

    # Hot path: pure VPU elementwise ops + XLU rolls, accumulation into VMEM planes.
    for bb in range(BB):
        pred = pred_ref[bb]      # (H, W)
        targ = targ_ref[bb]
        mask = mask_ref[bb]
        diff = mask * (pred - targ)
        macc_ref[...] += mask
        for s in range(scales):
            step = 1 << s
            if step < W:
                # roll by +step: out[j] = in[(j + step) mod W]
                d_x = pltpu.roll(diff, shift=W - step, axis=1)
                m_x = pltpu.roll(mask, shift=W - step, axis=1)
                gaccx_ref[s] += jnp.abs(d_x - diff) * (m_x * mask)
            if step < H:
                d_y = pltpu.roll(diff, shift=H - step, axis=0)
                m_y = pltpu.roll(mask, shift=H - step, axis=0)
                gaccy_ref[s] += jnp.abs(d_y - diff) * (m_y * mask)

    @pl.when(pl.program_id(1) == pl.num_programs(1) - 1)
    def _finalize():
        col = jax.lax.broadcasted_iota(jnp.int32, (H, W), 1)
        row = jax.lax.broadcasted_iota(jnp.int32, (H, W), 0)
        macc = macc_ref[...]
        for s in range(scales):
            step = 1 << s
            # positions that exist in the ::step downsampled image
            on_grid = ((row & (step - 1)) == 0) & ((col & (step - 1)) == 0)
            # additionally: neighbor at +step must exist (reproduces [:,1:]/[:,:-1])
            sel_x = (on_grid & (col + step < W)).astype(jnp.float32)
            sel_y = (on_grid & (row + step < H)).astype(jnp.float32)
            g = gaccx_ref[s] * sel_x + gaccy_ref[s] * sel_y
            gsum_ref[0, s] = jnp.sum(g, keepdims=True)
            msum_ref[0, s] = jnp.sum(macc * on_grid.astype(jnp.float32),
                                     keepdims=True)


def _pick_block_batch(B_per_core, H, W, scales, itemsize=4):
    """Largest divisor of B_per_core (<=8) whose double-buffered input tiles fit
    in the VMEM budget left after the per-scale accumulator planes."""
    plane = H * W * itemsize
    scratch = (2 * scales + 1) * plane
    budget = max((40 << 20) - scratch, 3 * plane * 2)  # always allow BB=1
    per_img = 3 * plane * 2                            # 3 inputs x 2 pipeline buffers
    bb = 1
    for cand in range(1, min(B_per_core, 8) + 1):
        if B_per_core % cand == 0 and cand * per_img <= budget:
            bb = cand
    return bb


def _gradient_loss_fused(prediction, target, mask, scales):
    B, H, W = prediction.shape

    # Split the batch across TensorCores when possible (leading "parallel" axis).
    nc = 2 if (B >= 2 and B % 2 == 0) else 1
    b_per_core = B // nc
    BB = _pick_block_batch(b_per_core, H, W, scales)
    nsteps = b_per_core // BB

    # Explicit VMEM budget: double-buffered input tiles + accumulator planes.
    plane = H * W * 4
    scratch_bytes = (2 * scales + 1) * plane
    io_bytes = 3 * BB * plane * 2
    vmem_limit = int(min(max((scratch_bytes + io_bytes) * 5 // 4, 32 << 20),
                         56 << 20))

    cost = pl.CostEstimate(
        flops=int(B * H * W * (3 + 12 * scales)),
        transcendentals=0,
        bytes_accessed=int(3 * B * H * W * 4),
    )

    gsum, msum = pl.pallas_call(
        _grad_loss_fused_kernel,
        out_shape=(jax.ShapeDtypeStruct((nc, scales, 1, 1), jnp.float32),
                   jax.ShapeDtypeStruct((nc, scales, 1, 1), jnp.float32)),
        grid_spec=pltpu.PrefetchScalarGridSpec(
            num_scalar_prefetch=0,
            grid=(nc, nsteps),
            in_specs=[
                pl.BlockSpec((BB, H, W), lambda c, b: (c * nsteps + b, 0, 0)),
                pl.BlockSpec((BB, H, W), lambda c, b: (c * nsteps + b, 0, 0)),
                pl.BlockSpec((BB, H, W), lambda c, b: (c * nsteps + b, 0, 0)),
            ],
            out_specs=[
                pl.BlockSpec((1, scales, 1, 1), lambda c, b: (c, 0, 0, 0)),
                pl.BlockSpec((1, scales, 1, 1), lambda c, b: (c, 0, 0, 0)),
            ],
            scratch_shapes=[
                pltpu.VMEM((scales, H, W), jnp.float32),   # grad_x accumulators
                pltpu.VMEM((scales, H, W), jnp.float32),   # grad_y accumulators
                pltpu.VMEM((H, W), jnp.float32),           # mask accumulator
            ],
        ),
        compiler_params=pltpu.CompilerParams(
            dimension_semantics=("parallel", "arbitrary"),
            vmem_limit_bytes=vmem_limit,
        ),
        cost_estimate=cost,
    )(prediction, target, mask)

    gsum = jnp.sum(gsum[:, :, 0, 0], axis=0)     # (scales,) summed over cores
    msum = jnp.sum(msum[:, :, 0, 0], axis=0)     # (scales,)
    safe = jnp.where(msum == 0, jnp.float32(1.0), msum)
    per_scale = jnp.where(msum == 0, jnp.float32(0.0), gsum / safe)
    return jnp.sum(per_scale)


@functools.partial(jax.jit, static_argnames=("scales",))
def gradient_loss_pallas(prediction, target, mask, scales=4):
    return _gradient_loss_fused(prediction.astype(jnp.float32),
                                target.astype(jnp.float32),
                                mask.astype(jnp.float32),
                                scales)


def _gradient_loss_reference(prediction, target, mask, scales=4):
    """Pure-JAX reference mirroring the PyTorch module (batch-based reduction)."""
    def one_scale(p, t, m):
        M = jnp.sum(m, axis=(1, 2))
        diff = m * (p - t)
        gx = jnp.abs(diff[:, :, 1:] - diff[:, :, :-1]) * (m[:, :, 1:] * m[:, :, :-1])
        gy = jnp.abs(diff[:, 1:, :] - diff[:, :-1, :]) * (m[:, 1:, :] * m[:, :-1, :])
        image_loss = jnp.sum(gx, axis=(1, 2)) + jnp.sum(gy, axis=(1, 2))
        div = jnp.sum(M)
        return jnp.where(div == 0, 0.0, jnp.sum(image_loss) / div)

    total = 0.0
    for scale in range(scales):
        step = 2 ** scale
        total = total + one_scale(prediction[:, ::step, ::step],
                                  target[:, ::step, ::step],
                                  mask[:, ::step, ::step])
    return total


if __name__ == "__main__":
    # GradientLoss has no learned parameters; scales=4, reduction='batch-based'.
    B, H, W = 2, 16, 16
    key = jax.random.PRNGKey(0)
    kp, kt, km = jax.random.split(key, 3)
    prediction = jax.random.normal(kp, (B, H, W), dtype=jnp.float32)
    target = jax.random.normal(kt, (B, H, W), dtype=jnp.float32)
    mask = jax.random.bernoulli(km, p=0.8, shape=(B, H, W)).astype(jnp.float32)

    out = gradient_loss_pallas(prediction, target, mask, scales=4)
    out = jax.block_until_ready(out)

    ref = _gradient_loss_reference(prediction, target, mask, scales=4)
    assert jnp.allclose(out, ref, rtol=1e-4, atol=1e-4), (out, ref)

    print("KERNEL_OK")
</pallas_src>

<mosaic_0001>
module attributes {stable_mosaic.version = 11 : i64} {
  func.func @_grad_loss_fused_kernel(%arg0: i32, %arg1: i32, %arg2: memref<1x16x16xf32, #tpu.memory_space<vmem>>, %arg3: memref<1x16x16xf32, #tpu.memory_space<vmem>>, %arg4: memref<1x16x16xf32, #tpu.memory_space<vmem>>, %arg5: memref<1x4x1x1xf32, #tpu.memory_space<vmem>>, %arg6: memref<1x4x1x1xf32, #tpu.memory_space<vmem>>, %arg7: memref<4x16x16xf32, #tpu.memory_space<vmem>>, %arg8: memref<4x16x16xf32, #tpu.memory_space<vmem>>, %arg9: memref<16x16xf32, #tpu.memory_space<vmem>>) attributes {dimension_semantics = [#tpu.dimension_semantics<parallel>, #tpu.dimension_semantics<arbitrary>], iteration_bounds = array<i64: 2, 1>, scalar_prefetch = 0 : i64, scratch_operands = 3 : i64, tpu.core_type = #tpu.core_type<tc>, window_params = [{transform_indices = @transform_0, window_bounds = array<i64: 1, 16, 16>}, {transform_indices = @transform_1, window_bounds = array<i64: 1, 16, 16>}, {transform_indices = @transform_2, window_bounds = array<i64: 1, 16, 16>}, {transform_indices = @transform_3, window_bounds = array<i64: 1, 4, 1, 1>}, {transform_indices = @transform_4, window_bounds = array<i64: 1, 4, 1, 1>}]} {
    %c0_i32 = arith.constant 0 : i32
    %0 = arith.cmpi eq, %arg1, %c0_i32 : i32
    %1 = arith.extui %0 : i1 to i32
    %c0_i32_0 = arith.constant 0 : i32
    %2 = arith.cmpi ne, %1, %c0_i32_0 : i32
    scf.if %2 {
      %cst = arith.constant 0.000000e+00 : f32
      %113 = vector.broadcast %cst : f32 to vector<4x16x16xf32>
      %c0_72 = arith.constant 0 : index
      %c0_73 = arith.constant 0 : index
      %c0_74 = arith.constant 0 : index
      %114 = vector.load %arg7[%c0_72, %c0_73, %c0_74] : memref<4x16x16xf32, #tpu.memory_space<vmem>>, vector<4x16x16xf32>
      tpu.vector_store %arg7[%c0_72, %c0_73, %c0_74], %113 {strides = array<i32>} : memref<4x16x16xf32, #tpu.memory_space<vmem>>, vector<4x16x16xf32>,
      %cst_75 = arith.constant 0.000000e+00 : f32
      %115 = vector.broadcast %cst_75 : f32 to vector<4x16x16xf32>
      %c0_76 = arith.constant 0 : index
      %c0_77 = arith.constant 0 : index
      %c0_78 = arith.constant 0 : index
      %116 = vector.load %arg8[%c0_76, %c0_77, %c0_78] : memref<4x16x16xf32, #tpu.memory_space<vmem>>, vector<4x16x16xf32>
      tpu.vector_store %arg8[%c0_76, %c0_77, %c0_78], %115 {strides = array<i32>} : memref<4x16x16xf32, #tpu.memory_space<vmem>>, vector<4x16x16xf32>,
      %cst_79 = arith.constant 0.000000e+00 : f32
      %117 = vector.broadcast %cst_79 : f32 to vector<16x16xf32>
      %c0_80 = arith.constant 0 : index
      %c0_81 = arith.constant 0 : index
      %118 = vector.load %arg9[%c0_80, %c0_81] : memref<16x16xf32, #tpu.memory_space<vmem>>, vector<16x16xf32>
      tpu.vector_store %arg9[%c0_80, %c0_81], %117 {strides = array<i32>} : memref<16x16xf32, #tpu.memory_space<vmem>>, vector<16x16xf32>,
    } else {
    }
    %c0 = arith.constant 0 : index
    %c0_1 = arith.constant 0 : index
    %c0_2 = arith.constant 0 : index
    %3 = vector.load %arg2[%c0, %c0_1, %c0_2] : memref<1x16x16xf32, #tpu.memory_space<vmem>>, vector<1x16x16xf32>
    %4 = vector.shape_cast %3 : vector<1x16x16xf32> to vector<16x16xf32>
    %c0_3 = arith.constant 0 : index
    %c0_4 = arith.constant 0 : index
    %c0_5 = arith.constant 0 : index
    %5 = vector.load %arg3[%c0_3, %c0_4, %c0_5] : memref<1x16x16xf32, #tpu.memory_space<vmem>>, vector<1x16x16xf32>
    %6 = vector.shape_cast %5 : vector<1x16x16xf32> to vector<16x16xf32>
    %c0_6 = arith.constant 0 : index
    %c0_7 = arith.constant 0 : index
    %c0_8 = arith.constant 0 : index
    %7 = vector.load %arg4[%c0_6, %c0_7, %c0_8] : memref<1x16x16xf32, #tpu.memory_space<vmem>>, vector<1x16x16xf32>
    %8 = vector.shape_cast %7 : vector<1x16x16xf32> to vector<16x16xf32>
    %9 = arith.subf %4, %6 : vector<16x16xf32>
    %10 = arith.mulf %8, %9 : vector<16x16xf32>
    %c0_9 = arith.constant 0 : index
    %c0_10 = arith.constant 0 : index
    %11 = vector.load %arg9[%c0_9, %c0_10] : memref<16x16xf32, #tpu.memory_space<vmem>>, vector<16x16xf32>
    %12 = arith.addf %11, %8 : vector<16x16xf32>
    %c0_11 = arith.constant 0 : index
    %c0_12 = arith.constant 0 : index
    %13 = vector.load %arg9[%c0_11, %c0_12] : memref<16x16xf32, #tpu.memory_space<vmem>>, vector<16x16xf32>
    tpu.vector_store %arg9[%c0_11, %c0_12], %12 {strides = array<i32>} : memref<16x16xf32, #tpu.memory_space<vmem>>, vector<16x16xf32>,
    %c15_i32 = arith.constant 15 : i32
    %14 = tpu.dynamic_rotate %10 by %c15_i32 dim 1 : vector<16x16xf32>, i32 -> vector<16x16xf32>
    %c15_i32_13 = arith.constant 15 : i32
    %15 = tpu.dynamic_rotate %8 by %c15_i32_13 dim 1 : vector<16x16xf32>, i32 -> vector<16x16xf32>
    %c0_14 = arith.constant 0 : index
    %c0_15 = arith.constant 0 : index
    %c0_16 = arith.constant 0 : index
    %16 = vector.load %arg7[%c0_14, %c0_15, %c0_16] : memref<4x16x16xf32, #tpu.memory_space<vmem>>, vector<1x16x16xf32>
    %17 = vector.shape_cast %16 : vector<1x16x16xf32> to vector<16x16xf32>
    %18 = arith.subf %14, %10 : vector<16x16xf32>
    %19 = math.absf %18 : vector<16x16xf32>
    %20 = arith.mulf %15, %8 : vector<16x16xf32>
    %21 = arith.mulf %19, %20 : vector<16x16xf32>
    %22 = arith.addf %17, %21 : vector<16x16xf32>
    %c0_17 = arith.constant 0 : index
    %c0_18 = arith.constant 0 : index
    %c0_19 = arith.constant 0 : index
    %23 = vector.load %arg7[%c0_17, %c0_18, %c0_19] : memref<4x16x16xf32, #tpu.memory_space<vmem>>, vector<1x16x16xf32>
    %24 = vector.shape_cast %23 : vector<1x16x16xf32> to vector<16x16xf32>
    %25 = vector.shape_cast %22 : vector<16x16xf32> to vector<1x16x16xf32>
    tpu.vector_store %arg7[%c0_17, %c0_18, %c0_19], %25 {strides = array<i32>} : memref<4x16x16xf32, #tpu.memory_space<vmem>>, vector<1x16x16xf32>,
    %c15_i32_20 = arith.constant 15 : i32
    %26 = tpu.dynamic_rotate %10 by %c15_i32_20 dim 0 : vector<16x16xf32>, i32 -> vector<16x16xf32>
    %c15_i32_21 = arith.constant 15 : i32
    %27 = tpu.dynamic_rotate %8 by %c15_i32_21 dim 0 : vector<16x16xf32>, i32 -> vector<16x16xf32>
    %c0_22 = arith.constant 0 : index
    %c0_23 = arith.constant 0 : index
    %c0_24 = arith.constant 0 : index
    %28 = vector.load %arg8[%c0_22, %c0_23, %c0_24] : memref<4x16x16xf32, #tpu.memory_space<vmem>>, vector<1x16x16xf32>
    %29 = vector.shape_cast %28 : vector<1x16x16xf32> to vector<16x16xf32>
    %30 = arith.subf %26, %10 : vector<16x16xf32>
    %31 = math.absf %30 : vector<16x16xf32>
    %32 = arith.mulf %27, %8 : vector<16x16xf32>
    %33 = arith.mulf %31, %32 : vector<16x16xf32>
    %34 = arith.addf %29, %33 : vector<16x16xf32>
    %c0_25 = arith.constant 0 : index
    %c0_26 = arith.constant 0 : index
    %c0_27 = arith.constant 0 : index
    %35 = vector.load %arg8[%c0_25, %c0_26, %c0_27] : memref<4x16x16xf32, #tpu.memory_space<vmem>>, vector<1x16x16xf32>
    %36 = vector.shape_cast %35 : vector<1x16x16xf32> to vector<16x16xf32>
    %37 = vector.shape_cast %34 : vector<16x16xf32> to vector<1x16x16xf32>
    tpu.vector_store %arg8[%c0_25, %c0_26, %c0_27], %37 {strides = array<i32>} : memref<4x16x16xf32, #tpu.memory_space<vmem>>, vector<1x16x16xf32>,
    %c14_i32 = arith.constant 14 : i32
    %38 = tpu.dynamic_rotate %10 by %c14_i32 dim 1 : vector<16x16xf32>, i32 -> vector<16x16xf32>
    %c14_i32_28 = arith.constant 14 : i32
    %39 = tpu.dynamic_rotate %8 by %c14_i32_28 dim 1 : vector<16x16xf32>, i32 -> vector<16x16xf32>
    %c1 = arith.constant 1 : index
    %c0_29 = arith.constant 0 : index
    %c0_30 = arith.constant 0 : index
    %40 = vector.load %arg7[%c1, %c0_29, %c0_30] : memref<4x16x16xf32, #tpu.memory_space<vmem>>, vector<1x16x16xf32>
    %41 = vector.shape_cast %40 : vector<1x16x16xf32> to vector<16x16xf32>
    %42 = arith.subf %38, %10 : vector<16x16xf32>
    %43 = math.absf %42 : vector<16x16xf32>
    %44 = arith.mulf %39, %8 : vector<16x16xf32>
    %45 = arith.mulf %43, %44 : vector<16x16xf32>
    %46 = arith.addf %41, %45 : vector<16x16xf32>
    %c1_31 = arith.constant 1 : index
    %c0_32 = arith.constant 0 : index
    %c0_33 = arith.constant 0 : index
    %47 = vector.load %arg7[%c1_31, %c0_32, %c0_33] : memref<4x16x16xf32, #tpu.memory_space<vmem>>, vector<1x16x16xf32>
    %48 = vector.shape_cast %47 : vector<1x16x16xf32> to vector<16x16xf32>
    %49 = vector.shape_cast %46 : vector<16x16xf32> to vector<1x16x16xf32>
    tpu.vector_store %arg7[%c1_31, %c0_32, %c0_33], %49 {strides = array<i32>} : memref<4x16x16xf32, #tpu.memory_space<vmem>>, vector<1x16x16xf32>,
    %c14_i32_34 = arith.constant 14 : i32
    %50 = tpu.dynamic_rotate %10 by %c14_i32_34 dim 0 : vector<16x16xf32>, i32 -> vector<16x16xf32>
    %c14_i32_35 = arith.constant 14 : i32
    %51 = tpu.dynamic_rotate %8 by %c14_i32_35 dim 0 : vector<16x16xf32>, i32 -> vector<16x16xf32>
    %c1_36 = arith.constant 1 : index
    %c0_37 = arith.constant 0 : index
    %c0_38 = arith.constant 0 : index
    %52 = vector.load %arg8[%c1_36, %c0_37, %c0_38] : memref<4x16x16xf32, #tpu.memory_space<vmem>>, vector<1x16x16xf32>
    %53 = vector.shape_cast %52 : vector<1x16x16xf32> to vector<16x16xf32>
    %54 = arith.subf %50, %10 : vector<16x16xf32>
    %55 = math.absf %54 : vector<16x16xf32>
    %56 = arith.mulf %51, %8 : vector<16x16xf32>
    %57 = arith.mulf %55, %56 : vector<16x16xf32>
    %58 = arith.addf %53, %57 : vector<16x16xf32>
    %c1_39 = arith.constant 1 : index
    %c0_40 = arith.constant 0 : index
    %c0_41 = arith.constant 0 : index
    %59 = vector.load %arg8[%c1_39, %c0_40, %c0_41] : memref<4x16x16xf32, #tpu.memory_space<vmem>>, vector<1x16x16xf32>
    %60 = vector.shape_cast %59 : vector<1x16x16xf32> to vector<16x16xf32>
    %61 = vector.shape_cast %58 : vector<16x16xf32> to vector<1x16x16xf32>
    tpu.vector_store %arg8[%c1_39, %c0_40, %c0_41], %61 {strides = array<i32>} : memref<4x16x16xf32, #tpu.memory_space<vmem>>, vector<1x16x16xf32>,
    %c12_i32 = arith.constant 12 : i32
    %62 = tpu.dynamic_rotate %10 by %c12_i32 dim 1 : vector<16x16xf32>, i32 -> vector<16x16xf32>
    %c12_i32_42 = arith.constant 12 : i32
    %63 = tpu.dynamic_rotate %8 by %c12_i32_42 dim 1 : vector<16x16xf32>, i32 -> vector<16x16xf32>
    %c2 = arith.constant 2 : index
    %c0_43 = arith.constant 0 : index
    %c0_44 = arith.constant 0 : index
    %64 = vector.load %arg7[%c2, %c0_43, %c0_44] : memref<4x16x16xf32, #tpu.memory_space<vmem>>, vector<1x16x16xf32>
    %65 = vector.shape_cast %64 : vector<1x16x16xf32> to vector<16x16xf32>
    %66 = arith.subf %62, %10 : vector<16x16xf32>
    %67 = math.absf %66 : vector<16x16xf32>
    %68 = arith.mulf %63, %8 : vector<16x16xf32>
    %69 = arith.mulf %67, %68 : vector<16x16xf32>
    %70 = arith.addf %65, %69 : vector<16x16xf32>
    %c2_45 = arith.constant 2 : index
    %c0_46 = arith.constant 0 : index
    %c0_47 = arith.constant 0 : index
    %71 = vector.load %arg7[%c2_45, %c0_46, %c0_47] : memref<4x16x16xf32, #tpu.memory_space<vmem>>, vector<1x16x16xf32>
    %72 = vector.shape_cast %71 : vector<1x16x16xf32> to vector<16x16xf32>
    %73 = vector.shape_cast %70 : vector<16x16xf32> to vector<1x16x16xf32>
    tpu.vector_store %arg7[%c2_45, %c0_46, %c0_47], %73 {strides = array<i32>} : memref<4x16x16xf32, #tpu.memory_space<vmem>>, vector<1x16x16xf32>,
    %c12_i32_48 = arith.constant 12 : i32
    %74 = tpu.dynamic_rotate %10 by %c12_i32_48 dim 0 : vector<16x16xf32>, i32 -> vector<16x16xf32>
    %c12_i32_49 = arith.constant 12 : i32
    %75 = tpu.dynamic_rotate %8 by %c12_i32_49 dim 0 : vector<16x16xf32>, i32 -> vector<16x16xf32>
    %c2_50 = arith.constant 2 : index
    %c0_51 = arith.constant 0 : index
    %c0_52 = arith.constant 0 : index
    %76 = vector.load %arg8[%c2_50, %c0_51, %c0_52] : memref<4x16x16xf32, #tpu.memory_space<vmem>>, vector<1x16x16xf32>
    %77 = vector.shape_cast %76 : vector<1x16x16xf32> to vector<16x16xf32>
    %78 = arith.subf %74, %10 : vector<16x16xf32>
    %79 = math.absf %78 : vector<16x16xf32>
    %80 = arith.mulf %75, %8 : vector<16x16xf32>
    %81 = arith.mulf %79, %80 : vector<16x16xf32>
    %82 = arith.addf %77, %81 : vector<16x16xf32>
    %c2_53 = arith.constant 2 : index
    %c0_54 = arith.constant 0 : index
    %c0_55 = arith.constant 0 : index
    %83 = vector.load %arg8[%c2_53, %c0_54, %c0_55] : memref<4x16x16xf32, #tpu.memory_space<vmem>>, vector<1x16x16xf32>
    %84 = vector.shape_cast %83 : vector<1x16x16xf32> to vector<16x16xf32>
    %85 = vector.shape_cast %82 : vector<16x16xf32> to vector<1x16x16xf32>
    tpu.vector_store %arg8[%c2_53, %c0_54, %c0_55], %85 {strides = array<i32>} : memref<4x16x16xf32, #tpu.memory_space<vmem>>, vector<1x16x16xf32>,
    %c8_i32 = arith.constant 8 : i32
    %86 = tpu.dynamic_rotate %10 by %c8_i32 dim 1 : vector<16x16xf32>, i32 -> vector<16x16xf32>
    %c8_i32_56 = arith.constant 8 : i32
    %87 = tpu.dynamic_rotate %8 by %c8_i32_56 dim 1 : vector<16x16xf32>, i32 -> vector<16x16xf32>
    %c3 = arith.constant 3 : index
    %c0_57 = arith.constant 0 : index
    %c0_58 = arith.constant 0 : index
    %88 = vector.load %arg7[%c3, %c0_57, %c0_58] : memref<4x16x16xf32, #tpu.memory_space<vmem>>, vector<1x16x16xf32>
    %89 = vector.shape_cast %88 : vector<1x16x16xf32> to vector<16x16xf32>
    %90 = arith.subf %86, %10 : vector<16x16xf32>
    %91 = math.absf %90 : vector<16x16xf32>
    %92 = arith.mulf %87, %8 : vector<16x16xf32>
    %93 = arith.mulf %91, %92 : vector<16x16xf32>
    %94 = arith.addf %89, %93 : vector<16x16xf32>
    %c3_59 = arith.constant 3 : index
    %c0_60 = arith.constant 0 : index
    %c0_61 = arith.constant 0 : index
    %95 = vector.load %arg7[%c3_59, %c0_60, %c0_61] : memref<4x16x16xf32, #tpu.memory_space<vmem>>, vector<1x16x16xf32>
    %96 = vector.shape_cast %95 : vector<1x16x16xf32> to vector<16x16xf32>
    %97 = vector.shape_cast %94 : vector<16x16xf32> to vector<1x16x16xf32>
    tpu.vector_store %arg7[%c3_59, %c0_60, %c0_61], %97 {strides = array<i32>} : memref<4x16x16xf32, #tpu.memory_space<vmem>>, vector<1x16x16xf32>,
    %c8_i32_62 = arith.constant 8 : i32
    %98 = tpu.dynamic_rotate %10 by %c8_i32_62 dim 0 : vector<16x16xf32>, i32 -> vector<16x16xf32>
    %c8_i32_63 = arith.constant 8 : i32
    %99 = tpu.dynamic_rotate %8 by %c8_i32_63 dim 0 : vector<16x16xf32>, i32 -> vector<16x16xf32>
    %c3_64 = arith.constant 3 : index
    %c0_65 = arith.constant 0 : index
    %c0_66 = arith.constant 0 : index
    %100 = vector.load %arg8[%c3_64, %c0_65, %c0_66] : memref<4x16x16xf32, #tpu.memory_space<vmem>>, vector<1x16x16xf32>
    %101 = vector.shape_cast %100 : vector<1x16x16xf32> to vector<16x16xf32>
    %102 = arith.subf %98, %10 : vector<16x16xf32>
    %103 = math.absf %102 : vector<16x16xf32>
    %104 = arith.mulf %99, %8 : vector<16x16xf32>
    %105 = arith.mulf %103, %104 : vector<16x16xf32>
    %106 = arith.addf %101, %105 : vector<16x16xf32>
    %c3_67 = arith.constant 3 : index
    %c0_68 = arith.constant 0 : index
    %c0_69 = arith.constant 0 : index
    %107 = vector.load %arg8[%c3_67, %c0_68, %c0_69] : memref<4x16x16xf32, #tpu.memory_space<vmem>>, vector<1x16x16xf32>
    %108 = vector.shape_cast %107 : vector<1x16x16xf32> to vector<16x16xf32>
    %109 = vector.shape_cast %106 : vector<16x16xf32> to vector<1x16x16xf32>
    tpu.vector_store %arg8[%c3_67, %c0_68, %c0_69], %109 {strides = array<i32>} : memref<4x16x16xf32, #tpu.memory_space<vmem>>, vector<1x16x16xf32>,
    %c0_i32_70 = arith.constant 0 : i32
    %110 = arith.cmpi eq, %arg1, %c0_i32_70 : i32
    %111 = arith.extui %110 : i1 to i32
    %c0_i32_71 = arith.constant 0 : i32
    %112 = arith.cmpi ne, %111, %c0_i32_71 : i32
    scf.if %112 {
      %113 = tpu.iota {dimensions = array<i32: 1>} : vector<16x16xi32>
      %114 = tpu.iota {dimensions = array<i32: 0>} : vector<16x16xi32>
      %c0_72 = arith.constant 0 : index
      %c0_73 = arith.constant 0 : index
      %115 = vector.load %arg9[%c0_72, %c0_73] : memref<16x16xf32, #tpu.memory_space<vmem>>, vector<16x16xf32>
      %c0_i32_74 = arith.constant 0 : i32
      %116 = vector.broadcast %c0_i32_74 : i32 to vector<16x16xi32>
      %117 = arith.andi %114, %116 : vector<16x16xi32>
      %c0_i32_75 = arith.constant 0 : i32
      %118 = vector.broadcast %c0_i32_75 : i32 to vector<16x16xi32>
      %119 = arith.cmpi eq, %117, %118 : vector<16x16xi32>
      %c0_i32_76 = arith.constant 0 : i32
      %120 = vector.broadcast %c0_i32_76 : i32 to vector<16x16xi32>
      %121 = arith.andi %113, %120 : vector<16x16xi32>
      %c0_i32_77 = arith.constant 0 : i32
      %122 = vector.broadcast %c0_i32_77 : i32 to vector<16x16xi32>
      %123 = arith.cmpi eq, %121, %122 : vector<16x16xi32>
      %124 = arith.andi %119, %123 : vector<16x16xi1>
      %c1_i32 = arith.constant 1 : i32
      %125 = vector.broadcast %c1_i32 : i32 to vector<16x16xi32>
      %126 = arith.addi %113, %125 : vector<16x16xi32>
      %c16_i32 = arith.constant 16 : i32
      %127 = vector.broadcast %c16_i32 : i32 to vector<16x16xi32>
      %128 = arith.cmpi slt, %126, %127 : vector<16x16xi32>
      %129 = arith.andi %124, %128 : vector<16x16xi1>
      %130 = arith.extui %129 : vector<16x16xi1> to vector<16x16xi32>
      %131 = arith.sitofp %130 : vector<16x16xi32> to vector<16x16xf32>
      %c1_i32_78 = arith.constant 1 : i32
      %132 = vector.broadcast %c1_i32_78 : i32 to vector<16x16xi32>
      %133 = arith.addi %114, %132 : vector<16x16xi32>
      %c16_i32_79 = arith.constant 16 : i32
      %134 = vector.broadcast %c16_i32_79 : i32 to vector<16x16xi32>
      %135 = arith.cmpi slt, %133, %134 : vector<16x16xi32>
      %136 = arith.andi %124, %135 : vector<16x16xi1>
      %137 = arith.extui %136 : vector<16x16xi1> to vector<16x16xi32>
      %138 = arith.sitofp %137 : vector<16x16xi32> to vector<16x16xf32>
      %c0_80 = arith.constant 0 : index
      %c0_81 = arith.constant 0 : index
      %c0_82 = arith.constant 0 : index
      %139 = vector.load %arg7[%c0_80, %c0_81, %c0_82] : memref<4x16x16xf32, #tpu.memory_space<vmem>>, vector<1x16x16xf32>
      %140 = vector.shape_cast %139 : vector<1x16x16xf32> to vector<16x16xf32>
      %141 = arith.mulf %140, %131 : vector<16x16xf32>
      %c0_83 = arith.constant 0 : index
      %c0_84 = arith.constant 0 : index
      %c0_85 = arith.constant 0 : index
      %142 = vector.load %arg8[%c0_83, %c0_84, %c0_85] : memref<4x16x16xf32, #tpu.memory_space<vmem>>, vector<1x16x16xf32>
      %143 = vector.shape_cast %142 : vector<1x16x16xf32> to vector<16x16xf32>
      %144 = arith.mulf %143, %138 : vector<16x16xf32>
      %145 = arith.addf %141, %144 : vector<16x16xf32>
      %146 = vector.shape_cast %145 : vector<16x16xf32> to vector<1x16x16xf32>
      %cst = arith.constant dense<0.000000e+00> : vector<1xf32>
      %147 = vector.multi_reduction <add>, %146, %cst [1, 2] : vector<1x16x16xf32> to vector<1xf32>
      %148 = vector.shape_cast %147 : vector<1xf32> to vector<1x1x1xf32>
      %149 = vector.extract %148[0, 0, 0] : f32 from vector<1x1x1xf32>
      %150 = vector.broadcast %149 : f32 to vector<1x1xf32>
      %c0_86 = arith.constant 0 : index
      %c0_87 = arith.constant 0 : index
      %c0_88 = arith.constant 0 : index
      %c0_89 = arith.constant 0 : index
      %151 = vector.load %arg5[%c0_86, %c0_87, %c0_88, %c0_89] : memref<1x4x1x1xf32, #tpu.memory_space<vmem>>, vector<1x1x1x1xf32>
      %152 = vector.shape_cast %151 : vector<1x1x1x1xf32> to vector<1x1xf32>
      %153 = vector.shape_cast %150 : vector<1x1xf32> to vector<1x1x1x1xf32>
      tpu.vector_store %arg5[%c0_86, %c0_87, %c0_88, %c0_89], %153 {strides = array<i32>} : memref<1x4x1x1xf32, #tpu.memory_space<vmem>>, vector<1x1x1x1xf32>,
      %154 = arith.extui %124 : vector<16x16xi1> to vector<16x16xi32>
      %155 = arith.sitofp %154 : vector<16x16xi32> to vector<16x16xf32>
      %156 = arith.mulf %115, %155 : vector<16x16xf32>
      %157 = vector.shape_cast %156 : vector<16x16xf32> to vector<1x16x16xf32>
      %cst_90 = arith.constant dense<0.000000e+00> : vector<1xf32>
      %158 = vector.multi_reduction <add>, %157, %cst_90 [1, 2] : vector<1x16x16xf32> to vector<1xf32>
      %159 = vector.shape_cast %158 : vector<1xf32> to vector<1x1x1xf32>
      %160 = vector.extract %159[0, 0, 0] : f32 from vector<1x1x1xf32>
      %161 = vector.broadcast %160 : f32 to vector<1x1xf32>
      %c0_91 = arith.constant 0 : index
      %c0_92 = arith.constant 0 : index
      %c0_93 = arith.constant 0 : index
      %c0_94 = arith.constant 0 : index
      %162 = vector.load %arg6[%c0_91, %c0_92, %c0_93, %c0_94] : memref<1x4x1x1xf32, #tpu.memory_space<vmem>>, vector<1x1x1x1xf32>
      %163 = vector.shape_cast %162 : vector<1x1x1x1xf32> to vector<1x1xf32>
      %164 = vector.shape_cast %161 : vector<1x1xf32> to vector<1x1x1x1xf32>
      tpu.vector_store %arg6[%c0_91, %c0_92, %c0_93, %c0_94], %164 {strides = array<i32>} : memref<1x4x1x1xf32, #tpu.memory_space<vmem>>, vector<1x1x1x1xf32>,
      %c1_i32_95 = arith.constant 1 : i32
      %165 = vector.broadcast %c1_i32_95 : i32 to vector<16x16xi32>
      %166 = arith.andi %114, %165 : vector<16x16xi32>
      %c0_i32_96 = arith.constant 0 : i32
      %167 = vector.broadcast %c0_i32_96 : i32 to vector<16x16xi32>
      %168 = arith.cmpi eq, %166, %167 : vector<16x16xi32>
      %c1_i32_97 = arith.constant 1 : i32
      %169 = vector.broadcast %c1_i32_97 : i32 to vector<16x16xi32>
      %170 = arith.andi %113, %169 : vector<16x16xi32>
      %c0_i32_98 = arith.constant 0 : i32
      %171 = vector.broadcast %c0_i32_98 : i32 to vector<16x16xi32>
      %172 = arith.cmpi eq, %170, %171 : vector<16x16xi32>
      %173 = arith.andi %168, %172 : vector<16x16xi1>
      %c2_i32 = arith.constant 2 : i32
      %174 = vector.broadcast %c2_i32 : i32 to vector<16x16xi32>
      %175 = arith.addi %113, %174 : vector<16x16xi32>
      %c16_i32_99 = arith.constant 16 : i32
      %176 = vector.broadcast %c16_i32_99 : i32 to vector<16x16xi32>
      %177 = arith.cmpi slt, %175, %176 : vector<16x16xi32>
      %178 = arith.andi %173, %177 : vector<16x16xi1>
      %179 = arith.extui %178 : vector<16x16xi1> to vector<16x16xi32>
      %180 = arith.sitofp %179 : vector<16x16xi32> to vector<16x16xf32>
      %c2_i32_100 = arith.constant 2 : i32
      %181 = vector.broadcast %c2_i32_100 : i32 to vector<16x16xi32>
      %182 = arith.addi %114, %181 : vector<16x16xi32>
      %c16_i32_101 = arith.constant 16 : i32
      %183 = vector.broadcast %c16_i32_101 : i32 to vector<16x16xi32>
      %184 = arith.cmpi slt, %182, %183 : vector<16x16xi32>
      %185 = arith.andi %173, %184 : vector<16x16xi1>
      %186 = arith.extui %185 : vector<16x16xi1> to vector<16x16xi32>
      %187 = arith.sitofp %186 : vector<16x16xi32> to vector<16x16xf32>
      %c1_102 = arith.constant 1 : index
      %c0_103 = arith.constant 0 : index
      %c0_104 = arith.constant 0 : index
      %188 = vector.load %arg7[%c1_102, %c0_103, %c0_104] : memref<4x16x16xf32, #tpu.memory_space<vmem>>, vector<1x16x16xf32>
      %189 = vector.shape_cast %188 : vector<1x16x16xf32> to vector<16x16xf32>
      %190 = arith.mulf %189, %180 : vector<16x16xf32>
      %c1_105 = arith.constant 1 : index
      %c0_106 = arith.constant 0 : index
      %c0_107 = arith.constant 0 : index
      %191 = vector.load %arg8[%c1_105, %c0_106, %c0_107] : memref<4x16x16xf32, #tpu.memory_space<vmem>>, vector<1x16x16xf32>
      %192 = vector.shape_cast %191 : vector<1x16x16xf32> to vector<16x16xf32>
      %193 = arith.mulf %192, %187 : vector<16x16xf32>
      %194 = arith.addf %190, %193 : vector<16x16xf32>
      %195 = vector.shape_cast %194 : vector<16x16xf32> to vector<1x16x16xf32>
      %cst_108 = arith.constant dense<0.000000e+00> : vector<1xf32>
      %196 = vector.multi_reduction <add>, %195, %cst_108 [1, 2] : vector<1x16x16xf32> to vector<1xf32>
      %197 = vector.shape_cast %196 : vector<1xf32> to vector<1x1x1xf32>
      %198 = vector.extract %197[0, 0, 0] : f32 from vector<1x1x1xf32>
      %199 = vector.broadcast %198 : f32 to vector<1x1xf32>
      %c0_109 = arith.constant 0 : index
      %c1_110 = arith.constant 1 : index
      %c0_111 = arith.constant 0 : index
      %c0_112 = arith.constant 0 : index
      %200 = vector.load %arg5[%c0_109, %c1_110, %c0_111, %c0_112] : memref<1x4x1x1xf32, #tpu.memory_space<vmem>>, vector<1x1x1x1xf32>
      %201 = vector.shape_cast %200 : vector<1x1x1x1xf32> to vector<1x1xf32>
      %202 = vector.shape_cast %199 : vector<1x1xf32> to vector<1x1x1x1xf32>
      tpu.vector_store %arg5[%c0_109, %c1_110, %c0_111, %c0_112], %202 {strides = array<i32>} : memref<1x4x1x1xf32, #tpu.memory_space<vmem>>, vector<1x1x1x1xf32>,
      %203 = arith.extui %173 : vector<16x16xi1> to vector<16x16xi32>
      %204 = arith.sitofp %203 : vector<16x16xi32> to vector<16x16xf32>
      %205 = arith.mulf %115, %204 : vector<16x16xf32>
      %206 = vector.shape_cast %205 : vector<16x16xf32> to vector<1x16x16xf32>
      %cst_113 = arith.constant dense<0.000000e+00> : vector<1xf32>
      %207 = vector.multi_reduction <add>, %206, %cst_113 [1, 2] : vector<1x16x16xf32> to vector<1xf32>
      %208 = vector.shape_cast %207 : vector<1xf32> to vector<1x1x1xf32>
      %209 = vector.extract %208[0, 0, 0] : f32 from vector<1x1x1xf32>
      %210 = vector.broadcast %209 : f32 to vector<1x1xf32>
      %c0_114 = arith.constant 0 : index
      %c1_115 = arith.constant 1 : index
      %c0_116 = arith.constant 0 : index
      %c0_117 = arith.constant 0 : index
      %211 = vector.load %arg6[%c0_114, %c1_115, %c0_116, %c0_117] : memref<1x4x1x1xf32, #tpu.memory_space<vmem>>, vector<1x1x1x1xf32>
      %212 = vector.shape_cast %211 : vector<1x1x1x1xf32> to vector<1x1xf32>
      %213 = vector.shape_cast %210 : vector<1x1xf32> to vector<1x1x1x1xf32>
      tpu.vector_store %arg6[%c0_114, %c1_115, %c0_116, %c0_117], %213 {strides = array<i32>} : memref<1x4x1x1xf32, #tpu.memory_space<vmem>>, vector<1x1x1x1xf32>,
      %c3_i32 = arith.constant 3 : i32
      %214 = vector.broadcast %c3_i32 : i32 to vector<16x16xi32>
      %215 = arith.andi %114, %214 : vector<16x16xi32>
      %c0_i32_118 = arith.constant 0 : i32
      %216 = vector.broadcast %c0_i32_118 : i32 to vector<16x16xi32>
      %217 = arith.cmpi eq, %215, %216 : vector<16x16xi32>
      %c3_i32_119 = arith.constant 3 : i32
      %218 = vector.broadcast %c3_i32_119 : i32 to vector<16x16xi32>
      %219 = arith.andi %113, %218 : vector<16x16xi32>
      %c0_i32_120 = arith.constant 0 : i32
      %220 = vector.broadcast %c0_i32_120 : i32 to vector<16x16xi32>
      %221 = arith.cmpi eq, %219, %220 : vector<16x16xi32>
      %222 = arith.andi %217, %221 : vector<16x16xi1>
      %c4_i32 = arith.constant 4 : i32
      %223 = vector.broadcast %c4_i32 : i32 to vector<16x16xi32>
      %224 = arith.addi %113, %223 : vector<16x16xi32>
      %c16_i32_121 = arith.constant 16 : i32
      %225 = vector.broadcast %c16_i32_121 : i32 to vector<16x16xi32>
      %226 = arith.cmpi slt, %224, %225 : vector<16x16xi32>
      %227 = arith.andi %222, %226 : vector<16x16xi1>
      %228 = arith.extui %227 : vector<16x16xi1> to vector<16x16xi32>
      %229 = arith.sitofp %228 : vector<16x16xi32> to vector<16x16xf32>
      %c4_i32_122 = arith.constant 4 : i32
      %230 = vector.broadcast %c4_i32_122 : i32 to vector<16x16xi32>
      %231 = arith.addi %114, %230 : vector<16x16xi32>
      %c16_i32_123 = arith.constant 16 : i32
      %232 = vector.broadcast %c16_i32_123 : i32 to vector<16x16xi32>
      %233 = arith.cmpi slt, %231, %232 : vector<16x16xi32>
      %234 = arith.andi %222, %233 : vector<16x16xi1>
      %235 = arith.extui %234 : vector<16x16xi1> to vector<16x16xi32>
      %236 = arith.sitofp %235 : vector<16x16xi32> to vector<16x16xf32>
      %c2_124 = arith.constant 2 : index
      %c0_125 = arith.constant 0 : index
      %c0_126 = arith.constant 0 : index
      %237 = vector.load %arg7[%c2_124, %c0_125, %c0_126] : memref<4x16x16xf32, #tpu.memory_space<vmem>>, vector<1x16x16xf32>
      %238 = vector.shape_cast %237 : vector<1x16x16xf32> to vector<16x16xf32>
      %239 = arith.mulf %238, %229 : vector<16x16xf32>
      %c2_127 = arith.constant 2 : index
      %c0_128 = arith.constant 0 : index
      %c0_129 = arith.constant 0 : index
      %240 = vector.load %arg8[%c2_127, %c0_128, %c0_129] : memref<4x16x16xf32, #tpu.memory_space<vmem>>, vector<1x16x16xf32>
      %241 = vector.shape_cast %240 : vector<1x16x16xf32> to vector<16x16xf32>
      %242 = arith.mulf %241, %236 : vector<16x16xf32>
      %243 = arith.addf %239, %242 : vector<16x16xf32>
      %244 = vector.shape_cast %243 : vector<16x16xf32> to vector<1x16x16xf32>
      %cst_130 = arith.constant dense<0.000000e+00> : vector<1xf32>
      %245 = vector.multi_reduction <add>, %244, %cst_130 [1, 2] : vector<1x16x16xf32> to vector<1xf32>
      %246 = vector.shape_cast %245 : vector<1xf32> to vector<1x1x1xf32>
      %247 = vector.extract %246[0, 0, 0] : f32 from vector<1x1x1xf32>
      %248 = vector.broadcast %247 : f32 to vector<1x1xf32>
      %c0_131 = arith.constant 0 : index
      %c2_132 = arith.constant 2 : index
      %c0_133 = arith.constant 0 : index
      %c0_134 = arith.constant 0 : index
      %249 = vector.load %arg5[%c0_131, %c2_132, %c0_133, %c0_134] : memref<1x4x1x1xf32, #tpu.memory_space<vmem>>, vector<1x1x1x1xf32>
      %250 = vector.shape_cast %249 : vector<1x1x1x1xf32> to vector<1x1xf32>
      %251 = vector.shape_cast %248 : vector<1x1xf32> to vector<1x1x1x1xf32>
      tpu.vector_store %arg5[%c0_131, %c2_132, %c0_133, %c0_134], %251 {strides = array<i32>} : memref<1x4x1x1xf32, #tpu.memory_space<vmem>>, vector<1x1x1x1xf32>,
      %252 = arith.extui %222 : vector<16x16xi1> to vector<16x16xi32>
      %253 = arith.sitofp %252 : vector<16x16xi32> to vector<16x16xf32>
      %254 = arith.mulf %115, %253 : vector<16x16xf32>
      %255 = vector.shape_cast %254 : vector<16x16xf32> to vector<1x16x16xf32>
      %cst_135 = arith.constant dense<0.000000e+00> : vector<1xf32>
      %256 = vector.multi_reduction <add>, %255, %cst_135 [1, 2] : vector<1x16x16xf32> to vector<1xf32>
      %257 = vector.shape_cast %256 : vector<1xf32> to vector<1x1x1xf32>
      %258 = vector.extract %257[0, 0, 0] : f32 from vector<1x1x1xf32>
      %259 = vector.broadcast %258 : f32 to vector<1x1xf32>
      %c0_136 = arith.constant 0 : index
      %c2_137 = arith.constant 2 : index
      %c0_138 = arith.constant 0 : index
      %c0_139 = arith.constant 0 : index
      %260 = vector.load %arg6[%c0_136, %c2_137, %c0_138, %c0_139] : memref<1x4x1x1xf32, #tpu.memory_space<vmem>>, vector<1x1x1x1xf32>
      %261 = vector.shape_cast %260 : vector<1x1x1x1xf32> to vector<1x1xf32>
      %262 = vector.shape_cast %259 : vector<1x1xf32> to vector<1x1x1x1xf32>
      tpu.vector_store %arg6[%c0_136, %c2_137, %c0_138, %c0_139], %262 {strides = array<i32>} : memref<1x4x1x1xf32, #tpu.memory_space<vmem>>, vector<1x1x1x1xf32>,
      %c7_i32 = arith.constant 7 : i32
      %263 = vector.broadcast %c7_i32 : i32 to vector<16x16xi32>
      %264 = arith.andi %114, %263 : vector<16x16xi32>
      %c0_i32_140 = arith.constant 0 : i32
      %265 = vector.broadcast %c0_i32_140 : i32 to vector<16x16xi32>
      %266 = arith.cmpi eq, %264, %265 : vector<16x16xi32>
      %c7_i32_141 = arith.constant 7 : i32
      %267 = vector.broadcast %c7_i32_141 : i32 to vector<16x16xi32>
      %268 = arith.andi %113, %267 : vector<16x16xi32>
      %c0_i32_142 = arith.constant 0 : i32
      %269 = vector.broadcast %c0_i32_142 : i32 to vector<16x16xi32>
      %270 = arith.cmpi eq, %268, %269 : vector<16x16xi32>
      %271 = arith.andi %266, %270 : vector<16x16xi1>
      %c8_i32_143 = arith.constant 8 : i32
      %272 = vector.broadcast %c8_i32_143 : i32 to vector<16x16xi32>
      %273 = arith.addi %113, %272 : vector<16x16xi32>
      %c16_i32_144 = arith.constant 16 : i32
      %274 = vector.broadcast %c16_i32_144 : i32 to vector<16x16xi32>
      %275 = arith.cmpi slt, %273, %274 : vector<16x16xi32>
      %276 = arith.andi %271, %275 : vector<16x16xi1>
      %277 = arith.extui %276 : vector<16x16xi1> to vector<16x16xi32>
      %278 = arith.sitofp %277 : vector<16x16xi32> to vector<16x16xf32>
      %c8_i32_145 = arith.constant 8 : i32
      %279 = vector.broadcast %c8_i32_145 : i32 to vector<16x16xi32>
      %280 = arith.addi %114, %279 : vector<16x16xi32>
      %c16_i32_146 = arith.constant 16 : i32
      %281 = vector.broadcast %c16_i32_146 : i32 to vector<16x16xi32>
      %282 = arith.cmpi slt, %280, %281 : vector<16x16xi32>
      %283 = arith.andi %271, %282 : vector<16x16xi1>
      %284 = arith.extui %283 : vector<16x16xi1> to vector<16x16xi32>
      %285 = arith.sitofp %284 : vector<16x16xi32> to vector<16x16xf32>
      %c3_147 = arith.constant 3 : index
      %c0_148 = arith.constant 0 : index
      %c0_149 = arith.constant 0 : index
      %286 = vector.load %arg7[%c3_147, %c0_148, %c0_149] : memref<4x16x16xf32, #tpu.memory_space<vmem>>, vector<1x16x16xf32>
      %287 = vector.shape_cast %286 : vector<1x16x16xf32> to vector<16x16xf32>
      %288 = arith.mulf %287, %278 : vector<16x16xf32>
      %c3_150 = arith.constant 3 : index
      %c0_151 = arith.constant 0 : index
      %c0_152 = arith.constant 0 : index
      %289 = vector.load %arg8[%c3_150, %c0_151, %c0_152] : memref<4x16x16xf32, #tpu.memory_space<vmem>>, vector<1x16x16xf32>
      %290 = vector.shape_cast %289 : vector<1x16x16xf32> to vector<16x16xf32>
      %291 = arith.mulf %290, %285 : vector<16x16xf32>
      %292 = arith.addf %288, %291 : vector<16x16xf32>
      %293 = vector.shape_cast %292 : vector<16x16xf32> to vector<1x16x16xf32>
      %cst_153 = arith.constant dense<0.000000e+00> : vector<1xf32>
      %294 = vector.multi_reduction <add>, %293, %cst_153 [1, 2] : vector<1x16x16xf32> to vector<1xf32>
      %295 = vector.shape_cast %294 : vector<1xf32> to vector<1x1x1xf32>
      %296 = vector.extract %295[0, 0, 0] : f32 from vector<1x1x1xf32>
      %297 = vector.broadcast %296 : f32 to vector<1x1xf32>
      %c0_154 = arith.constant 0 : index
      %c3_155 = arith.constant 3 : index
      %c0_156 = arith.constant 0 : index
      %c0_157 = arith.constant 0 : index
      %298 = vector.load %arg5[%c0_154, %c3_155, %c0_156, %c0_157] : memref<1x4x1x1xf32, #tpu.memory_space<vmem>>, vector<1x1x1x1xf32>
      %299 = vector.shape_cast %298 : vector<1x1x1x1xf32> to vector<1x1xf32>
      %300 = vector.shape_cast %297 : vector<1x1xf32> to vector<1x1x1x1xf32>
      tpu.vector_store %arg5[%c0_154, %c3_155, %c0_156, %c0_157], %300 {strides = array<i32>} : memref<1x4x1x1xf32, #tpu.memory_space<vmem>>, vector<1x1x1x1xf32>,
      %301 = arith.extui %271 : vector<16x16xi1> to vector<16x16xi32>
      %302 = arith.sitofp %301 : vector<16x16xi32> to vector<16x16xf32>
      %303 = arith.mulf %115, %302 : vector<16x16xf32>
      %304 = vector.shape_cast %303 : vector<16x16xf32> to vector<1x16x16xf32>
      %cst_158 = arith.constant dense<0.000000e+00> : vector<1xf32>
      %305 = vector.multi_reduction <add>, %304, %cst_158 [1, 2] : vector<1x16x16xf32> to vector<1xf32>
      %306 = vector.shape_cast %305 : vector<1xf32> to vector<1x1x1xf32>
      %307 = vector.extract %306[0, 0, 0] : f32 from vector<1x1x1xf32>
      %308 = vector.broadcast %307 : f32 to vector<1x1xf32>
      %c0_159 = arith.constant 0 : index
      %c3_160 = arith.constant 3 : index
      %c0_161 = arith.constant 0 : index
      %c0_162 = arith.constant 0 : index
      %309 = vector.load %arg6[%c0_159, %c3_160, %c0_161, %c0_162] : memref<1x4x1x1xf32, #tpu.memory_space<vmem>>, vector<1x1x1x1xf32>
      %310 = vector.shape_cast %309 : vector<1x1x1x1xf32> to vector<1x1xf32>
      %311 = vector.shape_cast %308 : vector<1x1xf32> to vector<1x1x1x1xf32>
      tpu.vector_store %arg6[%c0_159, %c3_160, %c0_161, %c0_162], %311 {strides = array<i32>} : memref<1x4x1x1xf32, #tpu.memory_space<vmem>>, vector<1x1x1x1xf32>,
    } else {
    }
    return
  }
  func.func @transform_0(%arg0: i32, %arg1: i32) -> (i32, i32, i32) {
    %c1_i32 = arith.constant 1 : i32
    %0 = arith.muli %arg0, %c1_i32 : i32
    %1 = arith.addi %0, %arg1 : i32
    %c0_i32 = arith.constant 0 : i32
    %c0_i32_0 = arith.constant 0 : i32
    %c0_i32_1 = arith.constant 0 : i32
    return %1, %c0_i32, %c0_i32_0 : i32, i32, i32
  }
  func.func @transform_1(%arg0: i32, %arg1: i32) -> (i32, i32, i32) {
    %c1_i32 = arith.constant 1 : i32
    %0 = arith.muli %arg0, %c1_i32 : i32
    %1 = arith.addi %0, %arg1 : i32
    %c0_i32 = arith.constant 0 : i32
    %c0_i32_0 = arith.constant 0 : i32
    %c0_i32_1 = arith.constant 0 : i32
    return %1, %c0_i32, %c0_i32_0 : i32, i32, i32
  }
  func.func @transform_2(%arg0: i32, %arg1: i32) -> (i32, i32, i32) {
    %c1_i32 = arith.constant 1 : i32
    %0 = arith.muli %arg0, %c1_i32 : i32
    %1 = arith.addi %0, %arg1 : i32
    %c0_i32 = arith.constant 0 : i32
    %c0_i32_0 = arith.constant 0 : i32
    %c0_i32_1 = arith.constant 0 : i32
    return %1, %c0_i32, %c0_i32_0 : i32, i32, i32
  }
  func.func @transform_3(%arg0: i32, %arg1: i32) -> (i32, i32, i32, i32) {
    %c0_i32 = arith.constant 0 : i32
    %c0_i32_0 = arith.constant 0 : i32
    %c0_i32_1 = arith.constant 0 : i32
    %c0_i32_2 = arith.constant 0 : i32
    return %arg0, %c0_i32, %c0_i32_0, %c0_i32_1 : i32, i32, i32, i32
  }
  func.func @transform_4(%arg0: i32, %arg1: i32) -> (i32, i32, i32, i32) {
    %c0_i32 = arith.constant 0 : i32
    %c0_i32_0 = arith.constant 0 : i32
    %c0_i32_1 = arith.constant 0 : i32
    %c0_i32_2 = arith.constant 0 : i32
    return %arg0, %c0_i32, %c0_i32_0, %c0_i32_1 : i32, i32, i32, i32
  }
}

</mosaic_0001>

<bundles_post_ra>
// kernel: gradient_loss_pallas.1
= control target key start
LH: loop header
LB: loop body
LE: loop exit
PB: predicated region body
PF: predicated region fallthrough
CT: control target
= control target key end

     0   :  { %10 = vsyncpa [#allocation6], 0  ;;  %s2032_s0 = inlined_call_operand.hbm [shape: f32[2,16,16], index: 0, kind: input, shape index: {}]   ;;  %s2033_s1 = inlined_call_operand.hbm [shape: f32[2,16,16], index: 1, kind: input, shape index: {}]   ;;  %s2034_s2 = inlined_call_operand.hbm [shape: f32[2,16,16], index: 2, kind: input, shape index: {}]   ;;  %s2035_s3 = inlined_call_operand.vmem [shape: f32[2,4,1,1], index: 3, kind: output, shape index: {0}]   ;;  %s2036_s4 = inlined_call_operand.vmem [shape: f32[2,4,1,1], index: 4, kind: output, shape index: {1}]  }
   0x1   :  { %12 = vsyncpa [#allocation6 + $0x1], 0 }
   0x2   :  { %13 = vsyncpa [#allocation8], 0 }
   0x3   :  { %15 = vsyncpa [#allocation8 + $0x1], 0  ;;  %s1375_s15 = smov 0   ;;  %s1377_s16 = smov 0  }
   0x4   :  { %s1379_s17 = smov 0   ;;  %s1381_s18 = smov 0  }
   0x5   :  { %s1383_s19 = smov 0   ;;  %s1385_s20 = smov 0  }
   0x6 LB: > { %s2038_s21 = sadd.s32 4294967295, %s1333_s20   ;;  %s33_s22 = sadd.s32 1, %s1329_s19  ;;  %s1333_s20 = sphi %s1385_s20, %s21_s20   ;;  %s1329_s19 = sphi %s1383_s19, %s2126_s19   ;;  %s1325_s18 = sphi %s1381_s18, %s2125_s18   ;;  %s1321_s17 = sphi %s1379_s17, %s2124_s17   ;;  %s1317_s16 = sphi %s1377_s16, %s2123_s16   ;;  %s1313_s15 = sphi %s1375_s15, %s2122_s15  }
   0x7   : > { %p35_p0 = scmp.ge.s32.totalorder %s33_s22, 2  ;;  %s42_s23 = sadd.s32 1, %s1321_s17 }
   0x8   : > { %p49_p1 = scmp.ne.s32.totalorder %s1321_s17, %s1317_s16  ;;  %p50_p2 = scmp.eq.s32.totalorder %s1333_s20, 0 }
   0x9   : > { %s2128_s22 = smov (%p35_p0, %s33_s22), 0  ;;  %p55_p4 = scmp.ne.s32.totalorder %s1317_s16, %s1313_s15 }
   0xa   : > { %p51_p3 = por %p50_p2, %p49_p1  ;;  %s39_s24 = ssub.s32 %s1329_s19, %s2128_s22 }
   0xb   : > { %p56_p5 = scmp.eq.s32.totalorder %s2038_s21, 0  ;;  %p40_p6 = scmp.eq.s32.totalorder %s39_s24, 0 }
   0xc   : > { %p1128_p8 = scmp.lt.s32.totalorder %s1333_s20, 2  ;;  %s187_s27 = sand.u32 1, %s1321_s17  }
   0xd   : > { %p1416_p7 = por %p56_p5, %p55_p4  ;;  %s1426_s28 = sshll.u32 %s1329_s19, 8 }
   0xe   : > { %s1422_s26 = scalar_select %p40_p6, %s1321_s17, %s42_s23  }
   0xf   : > { %s2044_s25 = scalar_select %p1416_p7, 1, 0 }
  0x10   : > { %s1430_s29 = sshll.u32 %s187_s27, 4  ;;  %p1432_p9 = pnand %p1128_p8, %p51_p3 }
  0x11   : > { %s209_s5 = sand.u32 1, %s1333_s20   ;;  %s1441_s8 = scalar_lea.hbm %s2033_s1, %s1426_s28 }
  0x12   : > { %s213_s9 = scalar_lea.vmem [#allocation7], %s1430_s29  ;;  %s1447_s11 = scalar_lea.sflag [#allocation8], %s209_s5 }
  0x13   : > { %s221_s10 = sshll.u32 %s213_s9, 4  ;;  %s1189_s12 = scalar_lea.hbm %s1441_s8, 256  ;;  %s1444_s10 = int_to_ptr.vmem [resolvable:$true] %s221_s10 }
  0x14   : > { %p1190_p11 = scmp.ne.s32.totalorder %s1441_s8, %s1189_s12  ;;  %p1453_p12 = pneg %p1432_p9 }
  0x15   : > { %s1194_s23 = scalar_lea.hbm %s2033_s1, 512  ;;  %p1195_p1 = scmp.lt.u32.totalorder %s1441_s8, %s2033_s1 }
  0x16   : > { %p1192_p13 = pnand %p1453_p12, %p1190_p11  ;;  %p1196_p2 = scmp.lt.u32.totalorder %s1194_s23, %s1189_s12 }
  0x17   : > { %p1198_p4 = scmp.lt.u32.totalorder %s1189_s12, %s1441_s8 }
  0x18   : > { %p1193_p0 = pneg %p1192_p13  ;;  %p1197_p3 = por %p1196_p2, %p1195_p1 }
  0x1a   : > { %p1199_p5 = por %p1198_p4, %p1197_p3 }
  0x1c   : > { %p1200_p6 = pnand %p1199_p5, %p1193_p0 }
  0x1e   : > { %1203 = shalt.err (!%p1200_p6)
}
  0x1f   : > { %s1204_s5 = scalar_lea.vmem %s1444_s10, 256  ;;  %s1335_s7 = smov [#allocation7]  }
  0x20   : > { %p1205_p8 = scmp.ne.s32.totalorder %s1444_s10, %s1204_s5  ;;  %s1209_s9 = sshll.u32 %s1335_s7, 4  ;;  %s1210_s9 = int_to_ptr.vmem [resolvable:$false] %s1209_s9 }
  0x21   : > { %s1211_s14 = scalar_lea.vmem %s1210_s9, 512  ;;  %p1212_p10 = scmp.lt.s32.totalorder %s1444_s10, %s1210_s9 }
  0x22   : > { %p1207_p11 = pnand %p1205_p8, %p1453_p12  ;;  %p1213_p7 = scmp.lt.s32.totalorder %s1211_s14, %s1204_s5 }
  0x24   : > { %p1208_p13 = pneg %p1207_p11  ;;  %p1214_p1 = por %p1213_p7, %p1212_p10 }
  0x26   : > { %p1215_p2 = pnand %p1214_p1, %p1208_p13 }
  0x28   : > { %1218 = shalt.err (!%p1215_p2)
}
  0x29   : > { %s2039_s12 = smov 128   ;;  %s1337_s15 = smov 8  }
  0x2a   : > { %1124 = dma.hbm_to_vmem [thread:$0]  (!%p1432_p9), %s1441_s8, 256, %s1444_s10, %s1447_s11, %s2039_s12, %s2039_s12, %s1337_s15  }
  0x2b   : > { %p251_p7 = scmp.lt.s32.totalorder %s1333_s20, 3  ;;  %p2047_p10 = scmp.ge.s32.totalorder %s1333_s20, 1 }
  0x2c   : > { %s1491_s5 = scalar_lea.hbm %s2032_s0, %s1426_s28  ;;  %s191_s7 = scalar_lea.vmem [#allocation5], %s1430_s29 }
  0x2d   : > { %p1483_p0 = pnand %p2047_p10, %p251_p7  ;;  %s199_s9 = sshll.u32 %s191_s7, 4  ;;  %s1494_s9 = int_to_ptr.vmem [resolvable:$true] %s199_s9 }
  0x2e   : > { %s1498_s8 = scalar_lea.sflag [#allocation6], %s187_s27  ;;  %s1219_s10 = scalar_lea.hbm %s1491_s5, 256 }
  0x2f   : > { %s2048_s23 = scalar_select %p1483_p0, 1, 0 }
  0x30   : > { %p1220_p3 = scmp.ne.s32.totalorder %s1491_s5, %s1219_s10  ;;  %s1224_s6 = scalar_lea.hbm %s2032_s0, 512 }
  0x31   : > { %p1225_p6 = scmp.lt.u32.totalorder %s1491_s5, %s2032_s0  ;;  %p1226_p8 = scmp.lt.u32.totalorder %s1224_s6, %s1219_s10 }
  0x32   : > { %p1222_p4 = pnand %p1220_p3, %p1453_p12  ;;  %p1228_p13 = scmp.lt.u32.totalorder %s1219_s10, %s1491_s5 }
  0x33   : > { %p1227_p11 = por %p1226_p8, %p1225_p6 }
  0x34   : > { %p1223_p5 = pneg %p1222_p4 }
  0x35   : > { %p1229_p1 = por %p1228_p13, %p1227_p11 }
  0x37   : > { %p1230_p2 = pnand %p1229_p1, %p1223_p5 }
  0x39   : > { %1233 = shalt.err (!%p1230_p2)
}
  0x3a   : > { %s1234_s27 = scalar_lea.vmem %s1494_s9, 256  ;;  %s1338_s7 = smov [#allocation5]  }
  0x3b   : > { %p1235_p7 = scmp.ne.s32.totalorder %s1494_s9, %s1234_s27  ;;  %s1239_s14 = sshll.u32 %s1338_s7, 4  ;;  %s1240_s14 = int_to_ptr.vmem [resolvable:$false] %s1239_s14 }
  0x3c   : > { %s1241_s21 = scalar_lea.vmem %s1240_s14, 512  ;;  %p1242_p4 = scmp.lt.s32.totalorder %s1494_s9, %s1240_s14 }
  0x3d   : > { %p1237_p10 = pnand %p1235_p7, %p1453_p12  ;;  %p1243_p0 = scmp.lt.s32.totalorder %s1241_s21, %s1234_s27 }
  0x3f   : > { %p1238_p3 = pneg %p1237_p10  ;;  %p1244_p6 = por %p1243_p0, %p1242_p4 }
  0x41   : > { %p1245_p8 = pnand %p1244_p6, %p1238_p3 }
  0x43   : > { %1248 = shalt.err (!%p1245_p8)
}
  0x44   : > { %s2049_s12 = smov 128   ;;  %s1529_s6 = scalar_lea.hbm %s2034_s2, %s1426_s28 }
  0x45   : > { %1121 = dma.hbm_to_vmem [thread:$0]  (!%p1432_p9), %s1491_s5, 256, %s1494_s9, %s1498_s8, %s2049_s12, %s2049_s12, %s1337_s15  }
  0x46   : > { %s235_s27 = scalar_lea.vmem [#allocation9], %s1430_s29  ;;  %s1249_s14 = scalar_lea.hbm %s1529_s6, 256 }
  0x47   : > { %s243_s7 = sshll.u32 %s235_s27, 4  ;;  %p1250_p0 = scmp.ne.s32.totalorder %s1529_s6, %s1249_s14  ;;  %s1532_s7 = int_to_ptr.vmem [resolvable:$true] %s243_s7 }
  0x48   : > { %s1254_s9 = scalar_lea.hbm %s2034_s2, 512  ;;  %p1255_p13 = scmp.lt.u32.totalorder %s1529_s6, %s2034_s2 }
  0x49   : > { %p1252_p5 = pnand %p1250_p0, %p1453_p12  ;;  %p1256_p1 = scmp.lt.u32.totalorder %s1254_s9, %s1249_s14 }
  0x4a   : > { %p1258_p7 = scmp.lt.u32.totalorder %s1249_s14, %s1529_s6 }
  0x4b   : > { %p1253_p11 = pneg %p1252_p5  ;;  %p1257_p2 = por %p1256_p1, %p1255_p13 }
  0x4d   : > { %p1259_p10 = por %p1258_p7, %p1257_p2 }
  0x4f   : > { %p1260_p3 = pnand %p1259_p10, %p1253_p11 }
  0x51   : > { %1263 = shalt.err (!%p1260_p3)
}
  0x52   : > { %s1264_s29 = scalar_lea.vmem %s1532_s7, 256  ;;  %s1339_s10 = smov [#allocation9]  }
  0x53   : > { %p1265_p4 = scmp.ne.s32.totalorder %s1532_s7, %s1264_s29  ;;  %s1269_s24 = sshll.u32 %s1339_s10, 4  ;;  %s1270_s24 = int_to_ptr.vmem [resolvable:$false] %s1269_s24 }
  0x54   : > { %s1271_s27 = scalar_lea.vmem %s1270_s24, 512  ;;  %p1272_p0 = scmp.lt.s32.totalorder %s1532_s7, %s1270_s24 }
  0x55   : > { %p1267_p6 = pnand %p1265_p4, %p1453_p12  ;;  %p1273_p5 = scmp.lt.s32.totalorder %s1271_s27, %s1264_s29 }
  0x57   : > { %p1268_p8 = pneg %p1267_p6  ;;  %p1274_p13 = por %p1273_p5, %p1272_p0 }
  0x59   : > { %p1275_p1 = pnand %p1274_p13, %p1268_p8 }
  0x5b   : > { %1278 = shalt.err (!%p1275_p1)
}
  0x5c   : > { %1127 = dma.hbm_to_vmem [thread:$0]  (!%p1432_p9), %s1529_s6, 256, %s1532_s7, %s1447_s11, %s2049_s12, %s2049_s12, %s1337_s15  }
  0x5d   : > { %p2050_p12 = scmp.ne.s32.totalorder %s2048_s23, 0 }
  0x5e   : > { %s257_s13 = sand.u32 (!%p2050_p12), 1, %s1317_s16   ;;  %p2051_p11 = scmp.ne.s32.totalorder (!%p2050_p12), %s2044_s25, 0 }
  0x5f   : > { %255 = sbr.rel (%p2050_p12) target bundleno = 707 (0x2c3), region = 32  ;;  %s1061_s14 = sshll.u32 (!%p2050_p12), %s257_s13, 4 }
  0x60   : > { %s258_s21 = scalar_lea.sflag (!%p2050_p12), [#allocation6], %s257_s13  ;;  %s261_s5 = scalar_lea.vmem (!%p2050_p12), [#allocation5], %s1061_s14 }
  0x66   : > { %1304 = dma.done.wait (%p2051_p11), %s258_s21, 256  }
  0x67   : > { %1306 = vsyncadd (%p2051_p11), %s258_s21, 4294967040  ;;  %s2052_s30 = sadd.s32 4294967295, %s1333_s20   ;;  %s270_s11 = scalar_lea.vmem [#allocation7], %s1061_s14 }
  0x68   : > { %s266_s9 = sand.u32 1, %s2052_s30  }
  0x69   : > { %s267_s8 = scalar_lea.sflag [#allocation8], %s266_s9 }
  0x6a   : > { %1308 = dma.done.wait (%p2051_p11), %s267_s8, 512  }
  0x6b   : > { %1310 = vsyncadd (%p2051_p11), %s267_s8, 4294966784  ;;  %s279_s15 = scalar_lea.vmem [#allocation9], %s1061_s14  ;;  %v351_v1 = vld [vmem:[%s261_s5] sm:$0xff]  ;;  %s1340_s23 = smov 16   ;;  %v352_v3 = vld [vmem:[%s261_s5 + $0x8] sm:$0xff]  ;;  %vm368_vm0 = vcmask 1047680   ;;  %v433_v30 = vlaneseq }
  0x6c   : > { %v1572_v0 = vld [vmem:[%s279_s15] sm:$0xff]  ;;  %v354_v4 = vld [vmem:[%s270_s11 + $0x8] sm:$0xff]  ;;  %s1341_s25 = smov 1   ;;  %s1342_s12 = smov 2   ;;  %vm2043_vm1 = vcmask 130048   ;;  %v1345_v18 = vmov 0.0  }
  0x6d   : > { %381 = vrot.lane.b32.xlu1 %v1572_v0, %s1340_s23  ;;  %v353_v2 = vld [vmem:[%s270_s11] sm:$0xff]  ;;  %v1576_v5 = vld [vmem:[%s279_s15 + $0x8] sm:$0xff]  ;;  %v358_v7 = vsub.f32 %v352_v3, %v354_v4  ;;  %s1343_s6 = smov 4   ;;  %s1344_s7 = smov 8   ;;  %333 = vst.msk [vmem:[#allocation2] sm:$0xff] %vm2043_vm1, %v1345_v18  ;;  %334 = vst.msk [vmem:[#allocation2 + $0x8] sm:$0xff] %vm2043_vm1, %v1345_v18 }
  0x6e   : > { %v357_v6 = vsub.f32 %v351_v1, %v353_v2  ;;  %335 = vst.msk [vmem:[#allocation2 + $0x10] sm:$0xff] %vm2043_vm1, %v1345_v18  ;;  %336 = vst.msk [vmem:[#allocation2 + $0x18] sm:$0xff] %vm2043_vm1, %v1345_v18  ;;  %v1674_v32 = vshrl.u32 %v433_v30, 7  ;;  %v438_v39 = vrot.slane %v1572_v0, 1  ;;  %v439_v40 = vrot.slane %v1576_v5, 1  ;;  %s1346_s28 = smov 127  }
  0x6f   : > { %v1586_v9 = vmul.f32 %v358_v7, %v1576_v5  ;;  %337 = vst.msk [vmem:[#allocation2 + $0x20] sm:$0xff] %vm2043_vm1, %v1345_v18  ;;  %338 = vst.msk [vmem:[#allocation2 + $0x28] sm:$0xff] %vm2043_vm1, %v1345_v18  ;;  %v1699_v56 = vand.u32 127, %v433_v30  ;;  %s1347_s29 = smov 126   ;;  %s1348_s10 = smov 124  }
  0x70   : > { %v1579_v8 = vmul.f32 %v357_v6, %v1572_v0  ;;  %339 = vst.msk [vmem:[#allocation2 + $0x30] sm:$0xff] %vm2043_vm1, %v1345_v18  ;;  %340 = vst.msk [vmem:[#allocation2 + $0x38] sm:$0xff] %vm2043_vm1, %v1345_v18  ;;  %vm435_vm2 = vcmp.lt.s32.totalorder %v1674_v32, 7  ;;  %v1704_v1 = vadd.s32 8, %v1674_v32  ;;  %vm493_vm3 = vcmp.lt.s32.totalorder %v1674_v32, 6  ;;  %s1349_s24 = smov 120  }
  0x71   : > { %384 = vrot.lane.b32.xlu1 %v1576_v5, %s1340_s23  ;;  %341 = vst.msk [vmem:[#allocation3] sm:$0xff] %vm2043_vm1, %v1345_v18  ;;  %342 = vst.msk [vmem:[#allocation3 + $0x8] sm:$0xff] %vm2043_vm1, %v1345_v18  ;;  %v432_v35 = vrot.slane %v1586_v9, 1  ;;  %v440_v46 = vsel %vm435_vm2, %v438_v39, %v439_v40  ;;  %v441_v51 = vsel %vm435_vm2, %v439_v40, %v438_v39  ;;  %v492_v62 = vrot.slane %v1586_v9, 2  ;;  %p320_p9 = scmp.lt.s32.totalorder %s1325_s18, 1 }
  0x72   : > { %369 = vrot.lane.b32.xlu0 %v1579_v8, %s1340_s23  ;;  %343 = vst.msk [vmem:[#allocation3 + $0x10] sm:$0xff] %vm2043_vm1, %v1345_v18  ;;  %344 = vst.msk [vmem:[#allocation3 + $0x18] sm:$0xff] %vm2043_vm1, %v1345_v18  ;;  %v431_v34 = vrot.slane %v1579_v8, 1  ;;  %v448_v49 = vmul.f32 %v440_v46, %v1572_v0  ;;  %v449_v53 = vmul.f32 %v441_v51, %v1576_v5  ;;  %v491_v61 = vrot.slane %v1579_v8, 2 }
  0x73   : > { %345 = vst.msk [vmem:[#allocation3 + $0x20] sm:$0xff] %vm2043_vm1, %v1345_v18  ;;  %346 = vst.msk [vmem:[#allocation3 + $0x28] sm:$0xff] %vm2043_vm1, %v1345_v18  ;;  %v682_v7 = vand.u32 1, %v1674_v32  ;;  %v683_v30 = vand.u32 1, %v1704_v1  ;;  %s2130_s18 = smov (!%p320_p9, %s1325_s18), 1 }
  0x74   : > { %347 = vst.msk [vmem:[#allocation3 + $0x30] sm:$0xff] %vm2043_vm1, %v1345_v18  ;;  %348 = vst.msk [vmem:[#allocation3 + $0x38] sm:$0xff] %vm2043_vm1, %v1345_v18  ;;  %v436_v38 = vsel %vm435_vm2, %v431_v34, %v432_v35  ;;  %v437_v45 = vsel %vm435_vm2, %v432_v35, %v431_v34  ;;  %v495_v46 = vsel %vm493_vm3, %v492_v62, %v491_v61  ;;  %s1064_s27 = sshll.u32 %s2130_s18, 2 }
  0x75   : > { %399 = vrot.lane.b32.xlu1 %v1586_v9, %s1341_s25  ;;  %349 = vst.msk [vmem:[#allocation4] sm:$0xff] %vm2043_vm1, %v1345_v18  ;;  %350 = vst.msk [vmem:[#allocation4 + $0x8] sm:$0xff] %vm2043_vm1, %v1345_v18  ;;  %v444_v43 = vsub.f32 %v436_v38, %v1579_v8  ;;  %v445_v47 = vsub.f32 %v437_v45, %v1586_v9  ;;  %vm1740_vm4 = vcmp.eq.s32.totalorder %v682_v7, 0  ;;  %vm1752_vm6 = vcmp.eq.s32.totalorder %v683_v30, 0  ;;  %s323_s21 = scalar_lea.vmem %s2035_s3, %s1064_s27  ;;  %s327_s8 = scalar_lea.vmem %s2036_s4, %s1064_s27 }
  0x76   : > { %372 = vrot.lane.b32.xlu0 %v1586_v9, %s1340_s23 }
  0x77   : > { %v446_v48 = vand.u32 2147483647, %v444_v43  ;;  %v447_v52 = vand.u32 2147483647, %v445_v47  ;;  %v754_v43 = vand.u32 3, %v1674_v32 }
  0x78   : > { %v442_v55 = vld [vmem:[#allocation3] sm:$0xff]  ;;  %v443_v60 = vld [vmem:[#allocation3 + $0x8] sm:$0xff] }
  0x79   : > { %461 = vrot.lane.b32.xlu1 %v1586_v9, %s1342_s12  ;;  %v450_v54 = vmul.f32 %v448_v49, %v446_v48  ;;  %v451_v57 = vmul.f32 %v449_v53, %v447_v52  ;;  %vm1792_vm11 = vcmp.eq.s32.totalorder %v754_v43, 0 }
  0x7a   : > { %397 = vrot.lane.b32.xlu0 %v1579_v8, %s1341_s25 }
  0x7b   : > { %v452_v58 = vadd.f32 %v450_v54, %v442_v55  ;;  %v453_v2 = vadd.f32 %v451_v57, %v443_v60 }
  0x7c   : > { %v361_v36 = vld [vmem:[#allocation4] sm:$0xff]  ;;  %v362_v37 = vld [vmem:[#allocation4 + $0x8] sm:$0xff] }
  0x7d   : > { %520 = vrot.lane.b32.xlu1 %v1586_v9, %s1343_s6  ;;  %v363_v41 = vadd.f32 %v361_v36, %v1572_v0  ;;  %v364_v42 = vadd.f32 %v362_v37, %v1576_v5  ;;  %454 = vst.msk [vmem:[#allocation3] sm:$0xff] %vm2043_vm1, %v452_v58  ;;  %455 = vst.msk [vmem:[#allocation3 + $0x8] sm:$0xff] %vm2043_vm1, %v453_v2  ;;  %v690_v36 = vadd.s32 2, %v1699_v56  ;;  %v762_v58 = vadd.s32 4, %v1699_v56 }
  0x7e   : > { %459 = vrot.lane.b32.xlu0 %v1579_v8, %s1342_s12 }
  0x7f   : > { %366 = vst.msk [vmem:[#allocation4] sm:$0xff] %vm2043_vm1, %v363_v41  ;;  %367 = vst.msk [vmem:[#allocation4 + $0x8] sm:$0xff] %vm2043_vm1, %v364_v42  ;;  %vm691_vm8 = vcmp.lt.s32.totalorder %v690_v36, 16  ;;  %vm763_vm15 = vcmp.lt.s32.totalorder %v762_v58, 16  ;;  %v612_v58 = vsub.f32 %v1586_v9, %v1579_v8 }
  0x81   : > { %579 = vrot.lane.b32.xlu1 %v1586_v9, %s1344_s7 }
  0x82   : > { %518 = vrot.lane.b32.xlu0 %v1579_v8, %s1343_s6 }
  0x85   : > { %411 = vrot.lane.b32.xlu1 %v1576_v5, %s1341_s25 }
  0x86   : > { %577 = vrot.lane.b32.xlu0 %v1579_v8, %s1344_s7 }
  0x89   : > { %471 = vrot.lane.b32.xlu1 %v1576_v5, %s1342_s12 }
  0x8a   : > { %409 = vrot.lane.b32.xlu0 %v1572_v0, %s1341_s25 }
  0x8d   : > { %530 = vrot.lane.b32.xlu1 %v1576_v5, %s1343_s6 }
  0x8e   : > { %469 = vrot.lane.b32.xlu0 %v1572_v0, %s1342_s12 }
  0x92   : > { %528 = vrot.lane.b32.xlu0 %v1572_v0, %s1343_s6 }
  0xdf   : > { %v382_v10 = vpop.permute.xlu1 %381 }
  0xe0   : > { %v383_v11 = vsel %vm368_vm0, %v382_v10, %v1572_v0  ;;  %v686_v10 = vand.u32 1, %v1699_v56 }
  0xe1   : > { %387 = vrot.lane.b32.xlu0 %v383_v11, %s1340_s23 }
  0xe2   : > { %vm1744_vm5 = vcmp.eq.s32.totalorder %v686_v10, 0 }
  0xe3   : > { %v385_v12 = vpop.permute.xlu1 %384  ;;  %vm2042_vm7 = vmand %vm1740_vm4, %vm1744_vm5 }
  0xe4   : > { %v370_v13 = vpop.permute.xlu0 %369  ;;  %v386_v14 = vsel %vm368_vm0, %v385_v12, %v1576_v5  ;;  %v494_v12 = vsel %vm493_vm3, %v491_v61, %v492_v62  ;;  %vm1770_vm9 = vmand %vm2042_vm7, %vm691_vm8 }
  0xe5   : > { %389 = vrot.lane.b32.xlu1 %v386_v14, %s1340_s23  ;;  %v371_v15 = vsel %vm368_vm0, %v370_v13, %v1579_v8  ;;  %v496_v13 = vrot.slane %v1572_v0, 2  ;;  %v497_v14 = vrot.slane %v1576_v5, 2  ;;  %vm1786_vm10 = vmand %vm1752_vm6, %vm1744_vm5  ;;  %v503_v61 = vsub.f32 %v494_v12, %v1579_v8 }
  0xe6   : > { %375 = vrot.lane.b32.xlu0 %v371_v15, %s1340_s23  ;;  %vm1801_vm12 = vmand %vm1786_vm10, %vm691_vm8  ;;  %vm552_vm8 = vcmp.lt.s32.totalorder %v1674_v32, 4 }
  0xe7   : > { %v1656_v20 = vpop.permute.xlu1 %399  ;;  %v498_v47 = vsel %vm493_vm3, %v496_v13, %v497_v14  ;;  %v499_v48 = vsel %vm493_vm3, %v497_v14, %v496_v13  ;;  %v505_v10 = vand.u32 2147483647, %v503_v61  ;;  %v2077_v61 = vmov 0 }
  0xe8   : > { %v373_v16 = vpop.permute.xlu0 %372  ;;  %v507_v2 = vmul.f32 %v498_v47, %v1572_v0 }
  0xe9   : > { %v374_v17 = vsel %vm368_vm0, %v373_v16, %v1586_v9 }
  0xea   : > { %587 = vrot.lane.b32.xlu0 %v1572_v0, %s1344_s7  ;;  %377 = vrot.lane.b32.xlu1 %v374_v17, %s1340_s23 }
  0xeb   : > { %v1660_v22 = vpop.permute.xlu1 %461 }
  0xec   : > { %v1654_v19 = vpop.permute.xlu0 %397 }
  0xee   : > { %589 = vrot.lane.b32.xlu1 %v1576_v5, %s1344_s7 }
  0xef   : > { %v1664_v24 = vpop.permute.xlu1 %520 }
  0xf0   : > { %v1658_v21 = vpop.permute.xlu0 %459 }
  0xf3   : > { %v1668_v26 = vpop.permute.xlu1 %579 }
  0xf4   : > { %v1662_v23 = vpop.permute.xlu0 %518 }
  0xf7   : > { %v1670_v28 = vpop.permute.xlu1 %411 }
  0xf8   : > { %v1666_v25 = vpop.permute.xlu0 %577 }
  0xfb   : > { %v1672_v31 = vpop.permute.xlu1 %471 }
  0xfc   : > { %v410_v27 = vpop.permute.xlu0 %409 }
  0xff   : > { %v1686_v44 = vpop.permute.xlu1 %530 }
 0x100   : > { %v470_v29 = vpop.permute.xlu0 %469 }
 0x104   : > { %v529_v33 = vpop.permute.xlu0 %528 }
 0x153   : > { %v388_v50 = vpop.permute.xlu0 %387 }
 0x154   : > { %v1710_v3 = vsel %vm368_vm0, %v388_v50, %v1572_v0 }
 0x155   : > { %v415_v15 = vmul.f32 %v410_v27, %v1710_v3  ;;  %v475_v16 = vmul.f32 %v470_v29, %v1710_v3  ;;  %v534_v34 = vmul.f32 %v529_v33, %v1710_v3 }
 0x157   : > { %v390_v59 = vpop.permute.xlu1 %389 }
 0x158   : > { %v376_v63 = vpop.permute.xlu0 %375 }
 0x159   : > { %v379_v4 = vsel %vm368_vm0, %v376_v63, %v1579_v8  ;;  %v504_v63 = vsub.f32 %v495_v46, %v1586_v9 }
 0x15a   : > { %v403_v6 = vsub.f32 %v379_v4, %v1654_v19  ;;  %v465_v11 = vsub.f32 %v379_v4, %v1658_v21  ;;  %v1729_v21 = vsel %vm368_vm0, %v390_v59, %v1576_v5  ;;  %v524_v38 = vsub.f32 %v379_v4, %v1662_v23 }
 0x15b   : > { %v583_v39 = vsub.f32 %v379_v4, %v1666_v25  ;;  %v755_v25 = vand.u32 3, %v1704_v1  ;;  %v476_v49 = vmul.f32 %v1672_v31, %v1729_v21  ;;  %v758_v31 = vand.u32 3, %v1699_v56 }
 0x15c   : > { %v378_v17 = vpop.permute.xlu1 %377  ;;  %v405_v19 = vand.u32 2147483647, %v403_v6  ;;  %v467_v41 = vand.u32 2147483647, %v465_v11  ;;  %v526_v52 = vand.u32 2147483647, %v524_v38  ;;  %v588_v54 = vpop.permute.xlu0 %587  ;;  %v508_v11 = vmul.f32 %v499_v48, %v1576_v5 }
 0x15d   : > { %v1733_v35 = vsel %vm368_vm0, %v378_v17, %v1586_v9  ;;  %v585_v50 = vand.u32 2147483647, %v583_v39  ;;  %v2065_v59 = vmov 0  ;;  %vm757_vm13 = vcmp.eq.s32.totalorder %v755_v25, 0 }
 0x15e   : > { %v404_v27 = vsub.f32 %v1733_v35, %v1656_v20  ;;  %v466_v29 = vsub.f32 %v1733_v35, %v1660_v22  ;;  %v417_v40 = vmul.f32 %v415_v15, %v405_v19  ;;  %v416_v20 = vmul.f32 %v1670_v28, %v1729_v21 }
 0x15f   : > { %v525_v45 = vsub.f32 %v1733_v35, %v1664_v24  ;;  %v477_v51 = vmul.f32 %v475_v16, %v467_v41  ;;  %v584_v55 = vsub.f32 %v1733_v35, %v1668_v26  ;;  %v2066_v59 = vsel %vm1801_vm12, 4294967295, %v2065_v59 }
 0x160   : > { %v406_v42 = vand.u32 2147483647, %v404_v27  ;;  %421 = vrot.lane.b32.xlu0 %v417_v40, %s1346_s28  ;;  %v468_v23 = vand.u32 2147483647, %v466_v29  ;;  %vm1806_vm14 = vcmp.eq.s32.totalorder %v758_v31, 0  ;;  %v593_v4 = vmul.f32 %v588_v54, %v1710_v3  ;;  %v590_v6 = vpop.permute.xlu1 %589  ;;  %v501_v3 = vld [vmem:[#allocation3 + $0x10] sm:$0xff] }
 0x161   : > { %v527_v26 = vand.u32 2147483647, %v525_v45  ;;  %v536_v7 = vmul.f32 %v534_v34, %v526_v52  ;;  %vm2041_vm0 = vmand %vm1792_vm11, %vm1806_vm14  ;;  %v535_v12 = vmul.f32 %v1686_v44, %v1729_v21  ;;  %v506_v14 = vand.u32 2147483647, %v504_v63  ;;  %v502_v44 = vld [vmem:[#allocation3 + $0x18] sm:$0xff]  ;;  %v560_v54 = vld [vmem:[#allocation3 + $0x20] sm:$0xff] }
 0x162   : > { %v418_v28 = vmul.f32 %v416_v20, %v406_v42  ;;  %v478_v60 = vmul.f32 %v476_v49, %v468_v23  ;;  %vm1822_vm2 = vmand %vm757_vm13, %vm1806_vm14  ;;  %v2071_v15 = vmov 0  ;;  %v509_v16 = vmul.f32 %v507_v2, %v505_v10  ;;  %v516_v63 = vld [vmem:[#allocation2 + $0x20] sm:$0xff] }
 0x163   : > { %vm1832_vm3 = vmand %vm2041_vm0, %vm763_vm15  ;;  %v586_v17 = vand.u32 2147483647, %v584_v55  ;;  %v594_v19 = vmul.f32 %v590_v6, %v1729_v21  ;;  %v537_v30 = vmul.f32 %v535_v12, %v527_v26  ;;  %v510_v34 = vmul.f32 %v508_v11, %v506_v14 }
 0x164   : > { %423 = vrot.lane.b32.xlu1 %v418_v28, %s1346_s28  ;;  %481 = vrot.lane.b32.xlu0 %v477_v51, %s1347_s29  ;;  %v2072_v15 = vsel %vm1832_vm3, 4294967295, %v2071_v15  ;;  %vm1840_vm6 = vmand %vm1822_vm2, %vm763_vm15  ;;  %v2073_v35 = vmov 0  ;;  %v595_v36 = vmul.f32 %v593_v4, %v585_v50  ;;  %v511_v27 = vadd.f32 %v509_v16, %v501_v3  ;;  %v630_v3 = vld [vmem:[#allocation4 + $0x8] sm:$0xff] }
 0x165   : > { %v2074_v35 = vsel %vm1840_vm6, 4294967295, %v2073_v35  ;;  %v699_v29 = vadd.s32 2, %v1704_v1  ;;  %v550_v38 = vrot.slane %v1579_v8, 4  ;;  %v512_v39 = vadd.f32 %v510_v34, %v502_v44 }
 0x166   : > { %v551_v40 = vrot.slane %v1586_v9, 4  ;;  %513 = vst.msk [vmem:[#allocation3 + $0x10] sm:$0xff] %vm2043_vm1, %v511_v27  ;;  %v555_v21 = vrot.slane %v1572_v0, 4  ;;  %v556_v41 = vrot.slane %v1576_v5, 4  ;;  %v596_v20 = vmul.f32 %v594_v19, %v586_v17  ;;  %v611_v27 = vld [vmem:[#allocation3 + $0x38] sm:$0xff] }
 0x167   : > { %vm701_vm13 = vcmp.lt.s32.totalorder %v699_v29, 16  ;;  %514 = vst.msk [vmem:[#allocation3 + $0x18] sm:$0xff] %vm2043_vm1, %v512_v39  ;;  %v771_v48 = vadd.s32 4, %v1704_v1  ;;  %v826_v50 = vand.u32 7, %v1674_v32  ;;  %v827_v51 = vand.u32 7, %v1704_v1  ;;  %v458_v32 = vld [vmem:[#allocation2 + $0x18] sm:$0xff] }
 0x168   : > { %483 = vrot.lane.b32.xlu1 %v478_v60, %s1347_s29  ;;  %540 = vrot.lane.b32.xlu0 %v536_v7, %s1348_s10  ;;  %vm1854_vm15 = vmand %vm1786_vm10, %vm701_vm13  ;;  %v553_v22 = vsel %vm552_vm8, %v550_v38, %v551_v40  ;;  %v554_v43 = vsel %vm552_vm8, %v551_v40, %v550_v38  ;;  %v557_v45 = vsel %vm552_vm8, %v555_v21, %v556_v41  ;;  %v830_v52 = vand.u32 7, %v1699_v56  ;;  %v561_v60 = vld [vmem:[#allocation3 + $0x28] sm:$0xff]  ;;  %v629_v7 = vld [vmem:[#allocation4] sm:$0xff] }
 0x169   : > { %v558_v23 = vsel %vm552_vm8, %v556_v41, %v555_v21  ;;  %v562_v25 = vsub.f32 %v553_v22, %v1579_v8  ;;  %v563_v28 = vsub.f32 %v554_v43, %v1586_v9  ;;  %v566_v46 = vmul.f32 %v557_v45, %v1572_v0 }
 0x16a   : > { %v567_v47 = vmul.f32 %v558_v23, %v1576_v5  ;;  %vm773_vm8 = vcmp.lt.s32.totalorder %v771_v48, 16  ;;  %v834_v31 = vadd.s32 8, %v1699_v56  ;;  %vm1875_vm0 = vcmp.eq.s32.totalorder %v826_v50, 0  ;;  %v393_v48 = vld [vmem:[#allocation2] sm:$0xff] }
 0x16b   : > { %v564_v49 = vand.u32 2147483647, %v562_v25  ;;  %v565_v55 = vand.u32 2147483647, %v563_v28  ;;  %vm1871_vm13 = vmand %vm1822_vm2, %vm773_vm8  ;;  %vm1879_vm7 = vcmp.eq.s32.totalorder %v827_v51, 0  ;;  %vm1883_vm1 = vcmp.eq.s32.totalorder %v830_v52, 0 }
 0x16c   : > { %542 = vrot.lane.b32.xlu1 %v537_v30, %s1348_s10  ;;  %599 = vrot.lane.b32.xlu0 %v595_v36, %s1349_s24  ;;  %v2078_v61 = vsel %vm1871_vm13, 4294967295, %v2077_v61  ;;  %vm832_vm8 = vmand %vm1875_vm0, %vm1883_vm1  ;;  %vm835_vm6 = vcmp.lt.s32.totalorder %v834_v31, 16  ;;  %v613_v6 = vsub.f32 %v1579_v8, %v1586_v9  ;;  %v614_v12 = vand.u32 2147483647, %v612_v58  ;;  %v610_v36 = vld [vmem:[#allocation3 + $0x30] sm:$0xff]  ;;  %v394_v51 = vld [vmem:[#allocation2 + $0x8] sm:$0xff] }
 0x16d   : > { %v568_v26 = vmul.f32 %v566_v46, %v564_v49  ;;  %v569_v4 = vmul.f32 %v567_v47, %v565_v55  ;;  %vm833_vm13 = vmand %vm1879_vm7, %vm1883_vm1  ;;  %v1898_v11 = vsel %vm832_vm8, 1.0, %v1345_v18  ;;  %vm2087_vm0 = vcmask 130048  }
 0x16e   : > { %vm1900_vm3 = vmand %vm832_vm8, %vm835_vm6  ;;  %v1089_v16 = vsel %vm833_vm13, 1.0, %v1345_v18  ;;  %v880_v8 = vmul.f32 %v1898_v11, %v629_v7  ;;  %v615_v19 = vand.u32 2147483647, %v613_v6  ;;  %v616_v30 = vmul.f32 %v1576_v5, %v1572_v0 }
 0x16f   : > { %v570_v10 = vadd.f32 %v568_v26, %v560_v54  ;;  %v571_v14 = vadd.f32 %v569_v4, %v561_v60  ;;  %vm1907_vm12 = vmand %vm833_vm13, %vm835_vm6  ;;  %v881_v17 = vmul.f32 %v1089_v16, %v630_v3  ;;  %v1074_v5 = vsel %vm1786_vm10, 1.0, %v1345_v18  ;;  %v457_v54 = vld [vmem:[#allocation2 + $0x10] sm:$0xff] }
 0x170   : > { %601 = vrot.lane.b32.xlu1 %v596_v20, %s1349_s24  ;;  %vm2090_vm1 = vmmov %vm2087_vm0  ;;  %v617_v38 = vmul.f32 %v616_v30, %v614_v12  ;;  %v618_v39 = vmul.f32 %v616_v30, %v615_v19  ;;  %v738_v22 = vmul.f32 %v1074_v5, %v630_v3  ;;  %v1082_v37 = vsel %vm1822_vm2, 1.0, %v1345_v18  ;;  %v648_v12 = vld [vmem:[#allocation3 + $0x8] sm:$0xff]  ;;  %v712_v16 = vld [vmem:[#allocation3 + $0x10] sm:$0xff] }
 0x171   : > { %572 = vst.msk [vmem:[#allocation3 + $0x20] sm:$0xff] %vm2087_vm0, %v570_v10  ;;  %vm2091_vm7 = vmmov %vm2087_vm0  ;;  %v810_v23 = vmul.f32 %v1082_v37, %v630_v3  ;;  %v631_v52 = vadd.s32 1, %v1699_v56  ;;  %v636_v55 = vadd.s32 1, %v1704_v1  ;;  %v647_v19 = vld [vmem:[#allocation3] sm:$0xff] }
 0x172   : > { %573 = vst.msk [vmem:[#allocation3 + $0x28] sm:$0xff] %vm2090_vm1, %v571_v14  ;;  %v882_v34 = vsel %vm2091_vm7, %v880_v8, 0.0  ;;  %vm2092_vm8 = vmmov %vm2087_vm0  ;;  %v619_v21 = vadd.f32 %v617_v38, %v610_v36  ;;  %v620_v41 = vadd.f32 %v618_v39, %v611_v27  ;;  %v1068_v27 = vsel %vm1770_vm9, 1.0, %v1345_v18  ;;  %v576_v38 = vld [vmem:[#allocation2 + $0x38] sm:$0xff] }
 0x173   : > { %v883_v29 = vsel %vm2092_vm8, %v881_v17, 0.0  ;;  %vm2093_vm6 = vmmov %vm2087_vm0  ;;  %vm632_vm8 = vcmp.lt.s32.totalorder %v631_v52, 16  ;;  %vm2110_vm9 = vnez %v2066_v59 }
 0x174   : > { %v1916_v40 = vadd.f32 %v883_v29, %v882_v34  ;;  %621 = vst.msk [vmem:[#allocation3 + $0x30] sm:$0xff] %vm2093_vm6, %v619_v21  ;;  %vm2094_vm13 = vmmov %vm2087_vm0  ;;  %v1066_v6 = vsel %vm632_vm8, 1.0, %v1345_v18  ;;  %v1071_v21 = vsel %vm1854_vm15, 1.0, %v1345_v18  ;;  %vm2111_vm15 = vnez %v2072_v15 }
 0x175   : > { %622 = vst.msk [vmem:[#allocation3 + $0x38] sm:$0xff] %vm2094_vm13, %v620_v41  ;;  %vm2095_vm0 = vmand %vm1740_vm4, %vm1744_vm5  ;;  %vm638_vm13 = vcmp.lt.s32.totalorder %v636_v55, 16  ;;  %v713_v41 = vld [vmem:[#allocation3 + $0x18] sm:$0xff]  ;;  %vm2116_vm8 = vnez %v2074_v35 }
 0x176   : > { %v1926_v0 = vsel %vm2095_vm0, 1.0, %v1345_v18  ;;  %vm2096_vm1 = vmand %vm1792_vm11, %vm1806_vm14  ;;  %v1067_v10 = vsel %vm638_vm13, 1.0, %v1345_v18 }
 0x177   : > { %v737_v20 = vmul.f32 %v1926_v0, %v629_v7  ;;  %v1938_v43 = vsel %vm2096_vm1, 1.0, %v1345_v18  ;;  %vm2097_vm4 = vmmov %vm2093_vm6  ;;  %v650_v36 = vmul.f32 %v1067_v10, %v648_v12  ;;  %v714_v5 = vmul.f32 %v1926_v0, %v712_v16 }
 0x178   : > { %vm2098_vm5 = vmmov %vm2097_vm4  ;;  %v809_v45 = vmul.f32 %v1938_v43, %v629_v7  ;;  %v1076_v0 = vsel %vm2111_vm15, 1.0, %v1345_v18 }
 0x179   : > { %v739_v33 = vsel %vm2097_vm4, %v737_v20, 0.0  ;;  %v740_v53 = vsel %vm2098_vm5, %v738_v22, 0.0  ;;  %vm2099_vm10 = vmmov %vm2097_vm4 }
 0x17a   : > { %v741_v25 = vadd.f32 %v740_v53, %v739_v33  ;;  %v811_v28 = vsel %vm2099_vm10, %v809_v45, 0.0  ;;  %vm2100_vm7 = vmmov %vm2097_vm4  ;;  %v784_v33 = vld [vmem:[#allocation3 + $0x20] sm:$0xff]  ;;  %v1069_v53 = vsel %vm2110_vm9, 1.0, %v1345_v18 }
 0x17b   : > { %v812_v57 = vsel %vm2100_vm7, %v810_v23, 0.0  ;;  %vm2101_vm11 = vmmov %vm2097_vm4  ;;  %vm2112_vm7 = vnez %v2078_v61 }
 0x17c   : > { %v813_v62 = vadd.f32 %v812_v57, %v811_v28  ;;  %v668_v46 = vsel %vm2101_vm11, %v629_v7, 0.0  ;;  %vm2102_vm14 = vmmov %vm2097_vm4  ;;  %v517_v7 = vld [vmem:[#allocation2 + $0x28] sm:$0xff] }
 0x17d   : > { %v669_v47 = vsel %vm2102_vm14, %v630_v3, 0.0  ;;  %vm2103_vm2 = vmmov %vm2097_vm4  ;;  %v575_v3 = vld [vmem:[#allocation2 + $0x30] sm:$0xff] }
 0x17e   : > { %v670_v13 = vadd.f32 %v669_v47, %v668_v46  ;;  %vm2104_vm6 = vmmov %vm2103_vm2  ;;  %v785_v46 = vld [vmem:[#allocation3 + $0x28] sm:$0xff]  ;;  %v786_v47 = vmul.f32 %v1938_v43, %v784_v33  ;;  %v1084_v43 = vsel %vm1900_vm3, 1.0, %v1345_v18 }
 0x17f   : > { %vm2105_vm0 = vmmov %vm2103_vm2 }
 0x180   : > { %vm2106_vm1 = vmmov %vm2105_vm0 }
 0x181   : > { %vm2107_vm4 = vmmov %vm2105_vm0 }
 0x182   : > { %vm2108_vm5 = vmmov %vm2105_vm0 }
 0x183   : > { %vm2109_vm10 = vmmov %vm2105_vm0 }
 0x184   : > { %vm2113_vm11 = vmmov %vm2105_vm0 }
 0x185   : > { %vm2114_vm14 = vmmov %vm2105_vm0 }
 0x186   : > { %vm2118_vm13 = vmmov %vm2105_vm0 }
 0x187   : > { %vm2119_vm3 = vmmov %vm2105_vm0 }
 0x18b   : > { %742 = vadd.xlane.f32.xlu0 %v741_v25  ;;  %v715_v25 = vmul.f32 %v1071_v21, %v713_v41 }
 0x18f   : > { %814 = vadd.xlane.f32.xlu0 %v813_v62  ;;  %v1079_v62 = vsel %vm2112_vm7, 1.0, %v1345_v18 }
 0x194   : > { %671 = vadd.xlane.f32.xlu1 %v670_v13 }
 0x1d2   : > { %v422_v49 = vpop.permute.xlu0 %421 }
 0x1d3   : > { %v427_v50 = vadd.f32 %v422_v49, %v393_v48 }
 0x1d5   : > { %429 = vst.msk [vmem:[#allocation2] sm:$0xff] %vm2103_vm2, %v427_v50  ;;  %vm2115_vm2 = vmmov %vm2105_vm0  ;;  %v855_v50 = vld [vmem:[#allocation3 + $0x30] sm:$0xff] }
 0x1d6   : > { %v424_v31 = vpop.permute.xlu1 %423  ;;  %v482_v60 = vpop.permute.xlu0 %481 }
 0x1d7   : > { %v428_v58 = vadd.f32 %v424_v31, %v394_v51  ;;  %v487_v26 = vadd.f32 %v482_v60, %v457_v54  ;;  %v1077_v51 = vsel %vm2116_vm8, 1.0, %v1345_v18  ;;  %v787_v54 = vmul.f32 %v1079_v62, %v785_v46 }
 0x1d8   : > { %v857_v60 = vmul.f32 %v1898_v11, %v855_v50 }
 0x1d9   : > { %430 = vst.msk [vmem:[#allocation2 + $0x8] sm:$0xff] %vm2104_vm6, %v428_v58  ;;  %v856_v58 = vld [vmem:[#allocation3 + $0x38] sm:$0xff]  ;;  %vm2117_vm6 = vmmov %vm2105_vm0 }
 0x1da   : > { %489 = vst.msk [vmem:[#allocation2 + $0x10] sm:$0xff] %vm2105_vm0, %v487_v26  ;;  %v484_v2 = vpop.permute.xlu1 %483  ;;  %v541_v56 = vpop.permute.xlu0 %540 }
 0x1db   : > { %v488_v4 = vadd.f32 %v484_v2, %v458_v32  ;;  %v546_v1 = vadd.f32 %v541_v56, %v516_v63 }
 0x1dc   : > { %v643_v14 = vld [vmem:[#allocation2] sm:$0xff] }
 0x1dd   : > { %490 = vst.msk [vmem:[#allocation2 + $0x18] sm:$0xff] %vm2106_vm1, %v488_v4  ;;  %v645_v17 = vmul.f32 %v1066_v6, %v643_v14  ;;  %v1085_v4 = vsel %vm1907_vm12, 1.0, %v1345_v18  ;;  %vm2120_vm1 = vmmov %vm2105_vm0  ;;  %vm666_vm12 = vcmask 0  }
 0x1de   : > { %548 = vst.msk [vmem:[#allocation2 + $0x20] sm:$0xff] %vm2107_vm4, %v546_v1  ;;  %v543_v8 = vpop.permute.xlu1 %542  ;;  %v600_v34 = vpop.permute.xlu0 %599  ;;  %vm2121_vm4 = vmmov %vm2105_vm0 }
 0x1df   : > { %v547_v30 = vadd.f32 %v543_v8, %v517_v7  ;;  %v605_v29 = vadd.f32 %v600_v34, %v575_v3  ;;  %v651_v22 = vadd.f32 %v647_v19, %v645_v17 }
 0x1e0   : > { %v644_v39 = vld [vmem:[#allocation2 + $0x8] sm:$0xff] }
 0x1e1   : > { %549 = vst.msk [vmem:[#allocation2 + $0x28] sm:$0xff] %vm2108_vm5, %v547_v30  ;;  %v646_v20 = vmul.f32 %v1066_v6, %v644_v39  ;;  %v708_v37 = vld [vmem:[#allocation2 + $0x10] sm:$0xff]  ;;  %v653_v59 = vsel %vm2114_vm14, %v651_v22, 0.0  ;;  %v858_v6 = vmul.f32 0.0, %v856_v58 }
 0x1e2   : > { %607 = vst.msk [vmem:[#allocation2 + $0x30] sm:$0xff] %vm2109_vm10, %v605_v29  ;;  %v602_v24 = vpop.permute.xlu1 %601  ;;  %v710_v45 = vmul.f32 %v1068_v27, %v708_v37 }
 0x1e3   : > { %v606_v23 = vadd.f32 %v602_v24, %v576_v38  ;;  %v652_v42 = vadd.f32 %v650_v36, %v646_v20 }
 0x1e4   : > { %v709_v28 = vld [vmem:[#allocation2 + $0x18] sm:$0xff]  ;;  %v716_v57 = vadd.f32 %v714_v5, %v710_v45 }
 0x1e5   : > { %608 = vst.msk [vmem:[#allocation2 + $0x38] sm:$0xff] %vm2113_vm11, %v606_v23  ;;  %v654_v13 = vsel %vm2115_vm2, %v652_v42, 0.0  ;;  %v711_v48 = vmul.f32 %v1069_v53, %v709_v28  ;;  %v780_v49 = vld [vmem:[#allocation2 + $0x20] sm:$0xff] }
 0x1e6   : > { %v655_v15 = vadd.f32 %v654_v13, %v653_v59  ;;  %v782_v52 = vmul.f32 %v1076_v0, %v780_v49  ;;  %v718_v26 = vsel %vm2117_vm6, %v716_v57, 0.0 }
 0x1e7   : > { %v717_v61 = vadd.f32 %v715_v25, %v711_v48 }
 0x1e8   : > { %656 = vadd.xlane.f32.xlu0 %v655_v15  ;;  %v781_v55 = vld [vmem:[#allocation2 + $0x28] sm:$0xff]  ;;  %v788_v31 = vadd.f32 %v786_v47, %v782_v52 }
 0x1e9   : > { %v719_v32 = vsel %vm2118_vm13, %v717_v61, 0.0  ;;  %v783_v63 = vmul.f32 %v1077_v51, %v781_v55  ;;  %v851_v35 = vld [vmem:[#allocation2 + $0x30] sm:$0xff] }
 0x1ea   : > { %v720_v2 = vadd.f32 %v719_v32, %v718_v26  ;;  %v853_v56 = vmul.f32 %v1084_v43, %v851_v35  ;;  %v790_v10 = vsel %vm2119_vm3, %v788_v31, 0.0 }
 0x1eb   : > { %v789_v44 = vadd.f32 %v787_v54, %v783_v63 }
 0x1ec   : > { %721 = vadd.xlane.f32.xlu0 %v720_v2  ;;  %v852_v1 = vld [vmem:[#allocation2 + $0x38] sm:$0xff]  ;;  %v859_v7 = vadd.f32 %v857_v60, %v853_v56 }
 0x1ed   : > { %v791_v11 = vsel %vm2105_vm0, %v789_v44, 0.0  ;;  %v854_v12 = vmul.f32 %v1085_v4, %v852_v1 }
 0x1ee   : > { %v792_v3 = vadd.f32 %v791_v11, %v790_v10  ;;  %v861_v16 = vsel %vm2120_vm1, %v859_v7, 0.0 }
 0x1ef   : > { %v860_v14 = vadd.f32 %v858_v6, %v854_v12 }
 0x1f0   : > { %793 = vadd.xlane.f32.xlu1 %v792_v3  ;;  %885 = vadd.xlane.f32.xlu0 %v1916_v40 }
 0x1f1   : > { %v862_v18 = vsel %vm2121_vm4, %v860_v14, 0.0 }
 0x1f2   : > { %v863_v9 = vadd.f32 %v862_v18, %v861_v16 }
 0x1f4   : > { %864 = vadd.xlane.f32.xlu1 %v863_v9 }
 0x218   : > { %v743_v17 = vpop.xlane.xlu0 %742 }
 0x219   : > { %v744_v30 = vrot.slane %v743_v17, 4 }
 0x21b   : > { %v745_v27 = vadd.f32 %v744_v30, %v743_v17 }
 0x21c   : > { %v815_v34 = vpop.xlane.xlu0 %814 }
 0x21d   : > { %v816_v29 = vrot.slane %v815_v34, 4  ;;  %v746_v5 = vrot.slane %v745_v27, 2 }
 0x21f   : > { %v817_v40 = vadd.f32 %v816_v29, %v815_v34  ;;  %v747_v0 = vadd.f32 %v746_v5, %v745_v27 }
 0x221   : > { %v672_v8 = vpop.xlane.xlu1 %671  ;;  %v818_v45 = vrot.slane %v817_v40, 2  ;;  %v748_v15 = vrot.slane %v747_v0, 1 }
 0x222   : > { %v673_v19 = vrot.slane %v672_v8, 4 }
 0x223   : > { %v819_v51 = vadd.f32 %v818_v45, %v817_v40  ;;  %v749_v26 = vadd.f32 %v748_v15, %v747_v0 }
 0x224   : > { %v674_v36 = vadd.f32 %v673_v19, %v672_v8 }
 0x225   : > { %v820_v32 = vrot.slane %v819_v51, 1 }
 0x226   : > { %v675_v38 = vrot.slane %v674_v36, 2 }
 0x227   : > { %v821_v56 = vadd.f32 %v820_v32, %v819_v51 }
 0x228   : > { %v676_v22 = vadd.f32 %v675_v38, %v674_v36 }
 0x22a   : > { %v677_v25 = vrot.slane %v676_v22, 1 }
 0x22c   : > { %v678_v50 = vadd.f32 %v677_v25, %v676_v22 }
 0x275   : > { %v657_v39 = vpop.xlane.xlu0 %656 }
 0x276   : > { %v658_v21 = vrot.slane %v657_v39, 4 }
 0x278   : > { %v659_v41 = vadd.f32 %v658_v21, %v657_v39 }
 0x279   : > { %v722_v20 = vpop.xlane.xlu0 %721 }
 0x27a   : > { %v660_v37 = vrot.slane %v659_v41, 2  ;;  %v723_v33 = vrot.slane %v722_v20, 4 }
 0x27c   : > { %v724_v24 = vadd.f32 %v723_v33, %v722_v20  ;;  %v661_v53 = vadd.f32 %v660_v37, %v659_v41 }
 0x27d   : > { %v794_v23 = vpop.xlane.xlu1 %793  ;;  %v886_v42 = vpop.xlane.xlu0 %885 }
 0x27e   : > { %v725_v28 = vrot.slane %v724_v24, 2  ;;  %v795_v57 = vrot.slane %v794_v23, 4  ;;  %v887_v62 = vrot.slane %v886_v42, 4  ;;  %v662_v46 = vrot.slane %v661_v53, 1 }
 0x280   : > { %v796_v47 = vadd.f32 %v795_v57, %v794_v23  ;;  %v888_v59 = vadd.f32 %v887_v62, %v886_v42  ;;  %v663_v13 = vadd.f32 %v662_v46, %v661_v53  ;;  %v726_v48 = vadd.f32 %v725_v28, %v724_v24 }
 0x281   : > { %v865_v49 = vpop.xlane.xlu1 %864 }
 0x282   : > { %v797_v52 = vrot.slane %v796_v47, 2  ;;  %v889_v61 = vrot.slane %v888_v59, 2  ;;  %v866_v54 = vrot.slane %v865_v49, 4  ;;  %1096 = vpush %v663_v13  ;;  %v727_v43 = vrot.slane %v726_v48, 1 }
 0x283   : > { %1098 = vpush %v678_v50 }
 0x284   : > { %v867_v55 = vadd.f32 %v866_v54, %v865_v49  ;;  %v728_v31 = vadd.f32 %v727_v43, %v726_v48  ;;  %v798_v58 = vadd.f32 %v797_v52, %v796_v47  ;;  %v890_v60 = vadd.f32 %v889_v61, %v888_v59 }
 0x286   : > { %v868_v63 = vrot.slane %v867_v55, 2  ;;  %1100 = vpush %v728_v31  ;;  %v799_v35 = vrot.slane %v798_v58, 1  ;;  %v891_v44 = vrot.slane %v890_v60, 1 }
 0x287   : > { %1102 = vpush %v749_v26 }
 0x288   : > { %v869_v2 = vadd.f32 %v868_v63, %v867_v55  ;;  %v800_v4 = vadd.f32 %v799_v35, %v798_v58  ;;  %v892_v7 = vadd.f32 %v891_v44, %v890_v60 }
 0x28a   : > { %1104 = vpush %v800_v4  ;;  %v870_v6 = vrot.slane %v869_v2, 1 }
 0x28b   : > { %1106 = vpush %v821_v56 }
 0x28c   : > { %v871_v1 = vadd.f32 %v870_v6, %v869_v2 }
 0x28e   : > { %1108 = vpush %v871_v1 }
 0x28f   : > { %1110 = vpush %v892_v7 }
 0x2b3   : > { %s1097_s5 = spop %1096 }
 0x2b4   : > { %v665_v10 = vstv %s1097_s5  ;;  %s1099_s11 = spop %1098 }
 0x2b5   : > { %667 = vst.msk [vmem:[%s323_s21] sm:$0x1] %vm666_vm12, %v665_v10  ;;  %v680_v11 = vstv %s1099_s11 }
 0x2b6   : > { %681 = vst.msk [vmem:[%s327_s8] sm:$0x1] %vm666_vm12, %v680_v11 }
 0x2b7   : > { %s1101_s15 = spop %1100 }
 0x2b8   : > { %v730_v12 = vstv %s1101_s15  ;;  %s1103_s18 = spop %1102 }
 0x2b9   : > { %1072 = vst.msk [vmem:[%s323_s21 + $0x1] sm:$0x1] %vm666_vm12, %v730_v12  ;;  %v751_v3 = vstv %s1103_s18 }
 0x2ba   : > { %1075 = vst.msk [vmem:[%s327_s8 + $0x1] sm:$0x1] %vm666_vm12, %v751_v3 }
 0x2bb   : > { %s1105_s23 = spop %1104 }
 0x2bc   : > { %v802_v14 = vstv %s1105_s23  ;;  %s1107_s25 = spop %1106 }
 0x2bd   : > { %1080 = vst.msk [vmem:[%s323_s21 + $0x2] sm:$0x1] %vm666_vm12, %v802_v14  ;;  %v823_v16 = vstv %s1107_s25 }
 0x2be   : > { %1083 = vst.msk [vmem:[%s327_s8 + $0x2] sm:$0x1] %vm666_vm12, %v823_v16 }
 0x2bf   : > { %s1109_s12 = spop %1108 }
 0x2c0   : > { %v873_v18 = vstv %s1109_s12  ;;  %s1111_s6 = spop %1110 }
 0x2c1   : > { %1087 = vst.msk [vmem:[%s323_s21 + $0x3] sm:$0x1] %vm666_vm12, %v873_v18  ;;  %v894_v9 = vstv %s1111_s6 }
 0x2c2   : > { %1090 = vst.msk [vmem:[%s327_s8 + $0x3] sm:$0x1] %vm666_vm12, %v894_v9 }
 0x2c3 PF: > { %s21_s20 = sadd.s32 1, %s1333_s20   ;;  %s2122_s15 = smov %s1317_s16 }
 0x2c4   : > { %p18_p2 = scmp.ge.s32.totalorder %s21_s20, 4   ;;  %s2123_s16 = smov %s1321_s17 }
 0x2c5   : > { %s2124_s17 = smov %s1422_s26  ;;  %s2125_s18 = smov %s1329_s19 }
 0x2c6   : > { %s2126_s19 = smov %s2128_s22  ;;  %20 = sbr.rel (!%p18_p2) target bundleno = 6 (0x6), region = 128 }
 0x2cd   :  { %930 = vsyncpa [#allocation6], 1 }
 0x2ce   :  { %932 = vsyncpa [#allocation6 + $0x1], 1 }
 0x2cf   :  { %933 = vsyncpa [#allocation8], 1 }
 0x2d0   :  { %935 = vsyncpa [#allocation8 + $0x1], 1 }

</bundles_post_ra>
